<compile_context>
chip_gen: v5e
topology: v5e:2x2
jax: 0.10.0
libtpu: 0.0.40
codegen_flags: <defaults>
</compile_context>

<pallas_src>
import functools

import jax
import jax.numpy as jnp
from jax import lax
from jax.experimental import pallas as pl
from jax.experimental.pallas import tpu as pltpu


def _upconv1d_kernel(*refs, step_lanes, w_win, l_tile, kernel_size, c_in, gather):
    """One grid step: B_TILE batch rows x one lane-dense output length tile.

    gather=True : x_ref holds ORIGINAL-resolution padded rows; nearest upsample is done
                  in-kernel with a constant-index lane gather.
    gather=False: x_ref already holds the nearest-upsampled padded rows (fallback path).
    """
    if gather:
        x_ref, gidx_ref, w_ref, b_ref, o_ref = refs
    else:
        x_ref, w_ref, b_ref, o_ref = refs
        gidx_ref = None

    jt = pl.program_id(1)
    b_tile, c_out, _ = o_ref.shape
    lg = l_tile + kernel_size - 1                    # upsampled window incl. conv taps

    start = jt * step_lanes
    if step_lanes % 128 == 0:
        start = pl.multiple_of(start, 128)           # aligned lane loads when tiled

    w_flat = w_ref[...]                              # (C_out, K*C_in)  f32
    bias = b_ref[...]                                # (C_out, 1)       f32

    for b in range(b_tile):                          # static, small (<= 8)
        window = x_ref[b, :, pl.ds(start, w_win)].astype(jnp.float32)   # (C_in, w_win)

        if gather:
            # Pad the window up to the gather width so source/index/result shapes match,
            # then expand to the upsampled resolution with one constant lane gather.
            if w_win < lg:
                window = jnp.concatenate(
                    [window, jnp.zeros((c_in, lg - w_win), jnp.float32)], axis=-1)
            x_up = jnp.take_along_axis(window, gidx_ref[...], axis=1)    # (C_in, Lg)
        else:
            x_up = window                                                # (C_in, Lg)

        # K shifted views stacked on the contraction axis -> one MXU dot of depth K*C_in.
        x_stack = jnp.concatenate(
            [x_up[:, t:t + l_tile] for t in range(kernel_size)], axis=0)  # (K*C_in, L_TILE)
        y = jnp.dot(w_flat, x_stack, preferred_element_type=jnp.float32)  # (C_out, L_TILE)
        y = y + bias
        o_ref[b] = y.astype(o_ref.dtype)


def _pick_q_tile(l, u):
    """Original-resolution tile length; output tile is u*q lanes (128-multiple when tiled)."""
    if l * u <= 2048:
        return l                                     # single tile: block dims == full dims
    q = max(128, ((2048 // u) // 128) * 128)         # ~<=2048 output lanes per step
    return min(q, -(-l // 128) * 128)


def _pick_b_tile(n, c_in, lp, itemsize):
    """Largest divisor of n (<= 8) whose double-buffered input block stays modest."""
    limit = 8 * 1024 * 1024
    best = 1
    for bt in range(1, min(n, 8) + 1):
        if n % bt == 0 and 2 * bt * c_in * lp * itemsize <= limit:
            best = bt
    return best


def _forward(x, weight, bias, u, *, gather):
    n, c_in, l = x.shape
    c_out, _, k = weight.shape
    l_out = l * u

    # PyTorch Conv1d(padding='same') convention.
    pad_left = (k - 1) // 2
    pad_right = (k - 1) - pad_left
    halo_l = -((-pad_left) // u)                     # ceil(pad_left / u) original samples
    halo_r = (u - 1 + pad_right) // u

    q_tile = _pick_q_tile(l, u)
    n_tiles = pl.cdiv(l, q_tile)
    l_padq = n_tiles * q_tile                        # original length rounded up to the grid
    l_tile = u * q_tile                              # output lanes per grid step
    l_out_pad = n_tiles * l_tile
    lg = l_tile + k - 1

    if gather:
        step_lanes = q_tile
        w_win = q_tile + halo_l + halo_r
        x_in = jnp.pad(x, ((0, 0), (0, 0), (halo_l, (l_padq - l) + halo_r)))
        # Constant gather index: x_up_window[:, m] == window[:, (m - pad_left)//u + halo_l].
        m = jnp.arange(lg, dtype=jnp.int32)
        gidx = jnp.broadcast_to(((m - pad_left) // u + halo_l)[None, :],
                                (c_in, lg)).astype(jnp.int32)
    else:
        # Fallback: nearest upsample once in XLA; kernel consumes the upsampled rows directly.
        step_lanes = l_tile
        w_win = lg
        x_up = jnp.repeat(x, u, axis=-1)
        x_in = jnp.pad(x_up, ((0, 0), (0, 0), (pad_left, (l_out_pad - l_out) + pad_right)))
        gidx = None
    lp = x_in.shape[-1]

    w_flat = jnp.transpose(weight, (0, 2, 1)).reshape(c_out, k * c_in).astype(jnp.float32)
    b2 = bias.reshape(c_out, 1).astype(jnp.float32)

    itemsize = x.dtype.itemsize
    b_tile = _pick_b_tile(n, c_in, lp, itemsize)

    kernel = functools.partial(
        _upconv1d_kernel, step_lanes=step_lanes, w_win=w_win, l_tile=l_tile,
        kernel_size=k, c_in=c_in, gather=gather)

    in_specs = [pl.BlockSpec((b_tile, c_in, lp), lambda bi, jt: (bi, 0, 0))]
    args = [x_in]
    if gather:
        in_specs.append(pl.BlockSpec((c_in, lg), lambda bi, jt: (0, 0)))
        args.append(gidx)
    in_specs += [
        pl.BlockSpec((c_out, k * c_in), lambda bi, jt: (0, 0)),
        pl.BlockSpec((c_out, 1), lambda bi, jt: (0, 0)),
    ]
    args += [w_flat, b2]

    # Explicit scoped-VMEM limit from the real working set (double-buffered blocks + temps).
    est = (2 * b_tile * c_in * lp * itemsize
           + 2 * b_tile * c_out * l_tile * itemsize
           + 2 * (c_in * lg * 4 + c_out * k * c_in * 4 + c_out * 4)
           + 4 * (2 * c_in * lg + k * c_in * l_tile + 2 * c_out * l_tile)
           + (2 << 20))
    vmem_limit = int(min(64 << 20, max(16 << 20, est)))

    flops = 2 * n * l_out * k * c_in * c_out         # conv MACs only; no selection matmul
    bytes_accessed = (int(x_in.size) * itemsize
                      + (int(gidx.size) * 4 if gather else 0)
                      + int(w_flat.size) * 4 + int(b2.size) * 4
                      + n * c_out * l_out_pad * itemsize)

    out = pl.pallas_call(
        kernel,
        out_shape=jax.ShapeDtypeStruct((n, c_out, l_out_pad), x.dtype),
        grid_spec=pltpu.PrefetchScalarGridSpec(
            num_scalar_prefetch=0,
            grid=(n // b_tile, n_tiles),
            in_specs=in_specs,
            out_specs=pl.BlockSpec((b_tile, c_out, l_tile), lambda bi, jt: (bi, 0, jt)),
        ),
        compiler_params=pltpu.CompilerParams(
            dimension_semantics=("parallel", "parallel"),
            vmem_limit_bytes=vmem_limit),
        cost_estimate=pl.CostEstimate(flops=int(flops), transcendentals=0,
                                      bytes_accessed=int(bytes_accessed)),
    )(*args)

    if l_out_pad != l_out:
        out = out[:, :, :l_out]
    return out


_GATHER_STATE = None   # None: untested, True: in-kernel gather works, False: use fallback


def upsample1d_layer(x, weight, bias, *, upsample, stride=1):
    """Forward pass of Upsample1DLayer: nearest Upsample(u) + Conv1d(padding='same').

    x      : (N, C_in, L)       weight : (C_out, C_in, K)      bias : (C_out,)
    Returns: (N, C_out, L * upsample)  in NCL layout, same as PyTorch.
    """
    global _GATHER_STATE
    assert stride == 1, "padding='same' in PyTorch requires stride == 1"
    u = int(upsample)
    assert u >= 1 and u == upsample, "nearest Upsample needs a positive integer scale factor"
    assert weight.shape[1] == x.shape[1]

    if _GATHER_STATE is False:
        return _forward(x, weight, bias, u, gather=False)
    try:
        out = _forward(x, weight, bias, u, gather=True)
        if _GATHER_STATE is None:
            # Validate the in-kernel gather lowering once against a pure-JAX reference.
            ref = _reference(x, weight, bias, u)
            if not bool(jnp.allclose(out, ref, atol=1e-5, rtol=1e-5)):
                raise RuntimeError("in-kernel lane gather miscompiled on this backend")
        _GATHER_STATE = True
        return out
    except Exception:
        # Lane gather unavailable on this backend: upsample once in XLA instead (extra
        # u*C_in*L HBM traffic), same fused conv kernel otherwise.
        _GATHER_STATE = False
        return _forward(x, weight, bias, u, gather=False)


def _reference(x, weight, bias, upsample):
    """Pure-JAX reference (torch.nn.Upsample(nearest) + Conv1d(padding='same'))."""
    x_up = jnp.repeat(x, upsample, axis=-1)
    k = weight.shape[-1]
    pad_left = (k - 1) // 2
    pad_right = (k - 1) - pad_left
    out = lax.conv_general_dilated(
        x_up, weight, window_strides=(1,), padding=[(pad_left, pad_right)],
        dimension_numbers=("NCH", "OIH", "NCH"))
    return out + bias[None, :, None]


if __name__ == "__main__":
    key = jax.random.PRNGKey(0)

    configs = [
        # (batch, c_in, c_out, kernel_size, upsample, length)
        (2, 4, 8, 5, 2, 2176),    # tiled path (3 length tiles) with a ragged tail (trim)
        (2, 4, 8, 3, 2, 16),      # tiny single-tile case (module-sized example)
        (2, 4, 8, 5, 2, 1024),    # single tile, 2048 lane-dense output lanes
        (1, 4, 8, 4, 3, 96),      # even kernel (asymmetric 'same' pad), odd upsample factor
        (8, 4, 8, 3, 2, 256),     # batch-blocked path (B_TILE = 8)
    ]
    for (batch, c_in, c_out, k, u, length) in configs:
        key, kx, kw, kb = jax.random.split(key, 4)
        x = jax.random.normal(kx, (batch, c_in, length), dtype=jnp.float32)

        # Deterministic Conv1d-style init (uniform in +-1/sqrt(fan_in)).
        fan_in = c_in * k
        bound = 1.0 / (fan_in ** 0.5)
        weight = jax.random.uniform(kw, (c_out, c_in, k),
                                    minval=-bound, maxval=bound, dtype=jnp.float32)
        bias = jax.random.uniform(kb, (c_out,),
                                  minval=-bound, maxval=bound, dtype=jnp.float32)

        out = jax.block_until_ready(upsample1d_layer(x, weight, bias, upsample=u))

        ref = _reference(x, weight, bias, u)
        assert out.shape == (batch, c_out, length * u), out.shape
        assert jnp.allclose(out, ref, atol=1e-5, rtol=1e-5), \
            f"mismatch vs reference for config {(batch, c_in, c_out, k, u, length)}"

    print("KERNEL_OK")
</pallas_src>

<mosaic_0001>
module attributes {stable_mosaic.version = 11 : i64} {
  func.func @_upconv1d_kernel(%arg0: i32, %arg1: i32, %arg2: memref<2x4x3074xf32, #tpu.memory_space<vmem>>, %arg3: memref<4x2052xi32, #tpu.memory_space<vmem>>, %arg4: memref<8x20xf32, #tpu.memory_space<vmem>>, %arg5: memref<8x1xf32, #tpu.memory_space<vmem>>, %arg6: memref<2x8x2048xf32, #tpu.memory_space<vmem>>) attributes {dimension_semantics = [#tpu.dimension_semantics<parallel>, #tpu.dimension_semantics<parallel>], iteration_bounds = array<i64: 1, 3>, scalar_prefetch = 0 : i64, scratch_operands = 0 : i64, tpu.core_type = #tpu.core_type<tc>, window_params = [{transform_indices = @transform_0, window_bounds = array<i64: 2, 4, 3074>}, {pipeline_mode = #tpu.pipeline_mode<synchronous>, transform_indices = @transform_1, window_bounds = array<i64: 4, 2052>}, {pipeline_mode = #tpu.pipeline_mode<synchronous>, transform_indices = @transform_2, window_bounds = array<i64: 8, 20>}, {pipeline_mode = #tpu.pipeline_mode<synchronous>, transform_indices = @transform_3, window_bounds = array<i64: 8, 1>}, {transform_indices = @transform_4, window_bounds = array<i64: 2, 8, 2048>}]} {
    %c1024_i32 = arith.constant 1024 : i32
    %0 = arith.muli %arg1, %c1024_i32 : i32
    %1 = tpu.assume_multiple %0, 128 : i32
    %c0 = arith.constant 0 : index
    %c0_0 = arith.constant 0 : index
    %2 = vector.load %arg4[%c0, %c0_0] : memref<8x20xf32, #tpu.memory_space<vmem>>, vector<8x20xf32>
    %c0_1 = arith.constant 0 : index
    %c0_2 = arith.constant 0 : index
    %3 = vector.load %arg5[%c0_1, %c0_2] : memref<8x1xf32, #tpu.memory_space<vmem>>, vector<8x1xf32>
    %c0_3 = arith.constant 0 : index
    %c0_4 = arith.constant 0 : index
    %4 = arith.index_cast %1 : i32 to index
    %5 = vector.load %arg2[%c0_3, %c0_4, %4] : memref<2x4x3074xf32, #tpu.memory_space<vmem>>, vector<1x4x1026xf32>
    %6 = vector.shape_cast %5 : vector<1x4x1026xf32> to vector<4x1026xf32>
    %cst = arith.constant 0.000000e+00 : f32
    %7 = vector.broadcast %cst : f32 to vector<4x1026xf32>
    %8 = tpu.concatenate %6, %7 in 1 : vector<4x1026xf32>, vector<4x1026xf32> -> vector<4x2052xf32>
    %c0_5 = arith.constant 0 : index
    %c0_6 = arith.constant 0 : index
    %9 = vector.load %arg3[%c0_5, %c0_6] : memref<4x2052xi32, #tpu.memory_space<vmem>>, vector<4x2052xi32>
    %c0_i32 = arith.constant 0 : i32
    %10 = vector.broadcast %c0_i32 : i32 to vector<4x2052xi32>
    %11 = arith.cmpi slt, %9, %10 : vector<4x2052xi32>
    %c2052_i32 = arith.constant 2052 : i32
    %12 = vector.broadcast %c2052_i32 : i32 to vector<4x2052xi32>
    %13 = arith.addi %9, %12 : vector<4x2052xi32>
    %14 = arith.select %11, %13, %9 : vector<4x2052xi1>, vector<4x2052xi32>
    %15 = vector.shape_cast %14 : vector<4x2052xi32> to vector<4x2052x1xi32>
    %16 = vector.shape_cast %15 : vector<4x2052x1xi32> to vector<4x2052xi32>
    %17 = tpu.dynamic_gather %8[%16] in [1] : vector<4x2052xf32>, vector<4x2052xi32> -> vector<4x2052xf32>
    %18 = vector.extract_strided_slice %17 {offsets = [0, 0], sizes = [4, 2048], strides = [1, 1]} : vector<4x2052xf32> to vector<4x2048xf32>
    %19 = vector.extract_strided_slice %17 {offsets = [0, 1], sizes = [4, 2048], strides = [1, 1]} : vector<4x2052xf32> to vector<4x2048xf32>
    %20 = vector.extract_strided_slice %17 {offsets = [0, 2], sizes = [4, 2048], strides = [1, 1]} : vector<4x2052xf32> to vector<4x2048xf32>
    %21 = vector.extract_strided_slice %17 {offsets = [0, 3], sizes = [4, 2048], strides = [1, 1]} : vector<4x2052xf32> to vector<4x2048xf32>
    %22 = vector.extract_strided_slice %17 {offsets = [0, 4], sizes = [4, 2048], strides = [1, 1]} : vector<4x2052xf32> to vector<4x2048xf32>
    %23 = tpu.concatenate %18, %19, %20, %21, %22 in 0 : vector<4x2048xf32>, vector<4x2048xf32>, vector<4x2048xf32>, vector<4x2048xf32>, vector<4x2048xf32> -> vector<20x2048xf32>
    %cst_7 = arith.constant dense<0.000000e+00> : vector<8x2048xf32>
    %24 = tpu.matmul %2, %23, %cst_7 {dimension_numbers = #tpu.dot_dimension_numbers<[1], [0], [0], [1], [0, 0, 1, 1], [], []>} : vector<8x20xf32>, vector<20x2048xf32>, vector<8x2048xf32> -> vector<8x2048xf32>
    %25 = vector.broadcast %3 : vector<8x1xf32> to vector<8x2048xf32>
    %26 = arith.addf %24, %25 : vector<8x2048xf32>
    %c0_8 = arith.constant 0 : index
    %c0_9 = arith.constant 0 : index
    %c0_10 = arith.constant 0 : index
    %27 = vector.load %arg6[%c0_8, %c0_9, %c0_10] : memref<2x8x2048xf32, #tpu.memory_space<vmem>>, vector<1x8x2048xf32>
    %28 = vector.shape_cast %27 : vector<1x8x2048xf32> to vector<8x2048xf32>
    %29 = vector.shape_cast %26 : vector<8x2048xf32> to vector<1x8x2048xf32>
    tpu.vector_store %arg6[%c0_8, %c0_9, %c0_10], %29 {strides = array<i32>} : memref<2x8x2048xf32, #tpu.memory_space<vmem>>, vector<1x8x2048xf32>,
    %c1 = arith.constant 1 : index
    %c0_11 = arith.constant 0 : index
    %30 = arith.index_cast %1 : i32 to index
    %31 = vector.load %arg2[%c1, %c0_11, %30] : memref<2x4x3074xf32, #tpu.memory_space<vmem>>, vector<1x4x1026xf32>
    %32 = vector.shape_cast %31 : vector<1x4x1026xf32> to vector<4x1026xf32>
    %cst_12 = arith.constant 0.000000e+00 : f32
    %33 = vector.broadcast %cst_12 : f32 to vector<4x1026xf32>
    %34 = tpu.concatenate %32, %33 in 1 : vector<4x1026xf32>, vector<4x1026xf32> -> vector<4x2052xf32>
    %c0_13 = arith.constant 0 : index
    %c0_14 = arith.constant 0 : index
    %35 = vector.load %arg3[%c0_13, %c0_14] : memref<4x2052xi32, #tpu.memory_space<vmem>>, vector<4x2052xi32>
    %c0_i32_15 = arith.constant 0 : i32
    %36 = vector.broadcast %c0_i32_15 : i32 to vector<4x2052xi32>
    %37 = arith.cmpi slt, %35, %36 : vector<4x2052xi32>
    %c2052_i32_16 = arith.constant 2052 : i32
    %38 = vector.broadcast %c2052_i32_16 : i32 to vector<4x2052xi32>
    %39 = arith.addi %35, %38 : vector<4x2052xi32>
    %40 = arith.select %37, %39, %35 : vector<4x2052xi1>, vector<4x2052xi32>
    %41 = vector.shape_cast %40 : vector<4x2052xi32> to vector<4x2052x1xi32>
    %42 = vector.shape_cast %41 : vector<4x2052x1xi32> to vector<4x2052xi32>
    %43 = tpu.dynamic_gather %34[%42] in [1] : vector<4x2052xf32>, vector<4x2052xi32> -> vector<4x2052xf32>
    %44 = vector.extract_strided_slice %43 {offsets = [0, 0], sizes = [4, 2048], strides = [1, 1]} : vector<4x2052xf32> to vector<4x2048xf32>
    %45 = vector.extract_strided_slice %43 {offsets = [0, 1], sizes = [4, 2048], strides = [1, 1]} : vector<4x2052xf32> to vector<4x2048xf32>
    %46 = vector.extract_strided_slice %43 {offsets = [0, 2], sizes = [4, 2048], strides = [1, 1]} : vector<4x2052xf32> to vector<4x2048xf32>
    %47 = vector.extract_strided_slice %43 {offsets = [0, 3], sizes = [4, 2048], strides = [1, 1]} : vector<4x2052xf32> to vector<4x2048xf32>
    %48 = vector.extract_strided_slice %43 {offsets = [0, 4], sizes = [4, 2048], strides = [1, 1]} : vector<4x2052xf32> to vector<4x2048xf32>
    %49 = tpu.concatenate %44, %45, %46, %47, %48 in 0 : vector<4x2048xf32>, vector<4x2048xf32>, vector<4x2048xf32>, vector<4x2048xf32>, vector<4x2048xf32> -> vector<20x2048xf32>
    %cst_17 = arith.constant dense<0.000000e+00> : vector<8x2048xf32>
    %50 = tpu.matmul %2, %49, %cst_17 {dimension_numbers = #tpu.dot_dimension_numbers<[1], [0], [0], [1], [0, 0, 1, 1], [], []>} : vector<8x20xf32>, vector<20x2048xf32>, vector<8x2048xf32> -> vector<8x2048xf32>
    %51 = vector.broadcast %3 : vector<8x1xf32> to vector<8x2048xf32>
    %52 = arith.addf %50, %51 : vector<8x2048xf32>
    %c1_18 = arith.constant 1 : index
    %c0_19 = arith.constant 0 : index
    %c0_20 = arith.constant 0 : index
    %53 = vector.load %arg6[%c1_18, %c0_19, %c0_20] : memref<2x8x2048xf32, #tpu.memory_space<vmem>>, vector<1x8x2048xf32>
    %54 = vector.shape_cast %53 : vector<1x8x2048xf32> to vector<8x2048xf32>
    %55 = vector.shape_cast %52 : vector<8x2048xf32> to vector<1x8x2048xf32>
    tpu.vector_store %arg6[%c1_18, %c0_19, %c0_20], %55 {strides = array<i32>} : memref<2x8x2048xf32, #tpu.memory_space<vmem>>, vector<1x8x2048xf32>,
    return
  }
  func.func @transform_0(%arg0: i32, %arg1: i32) -> (i32, i32, i32) {
    %c0_i32 = arith.constant 0 : i32
    %c0_i32_0 = arith.constant 0 : i32
    %c0_i32_1 = arith.constant 0 : i32
    return %arg0, %c0_i32, %c0_i32_0 : i32, i32, i32
  }
  func.func @transform_1(%arg0: i32, %arg1: i32) -> (i32, i32) {
    %c0_i32 = arith.constant 0 : i32
    %c0_i32_0 = arith.constant 0 : i32
    %c0_i32_1 = arith.constant 0 : i32
    return %c0_i32, %c0_i32_0 : i32, i32
  }
  func.func @transform_2(%arg0: i32, %arg1: i32) -> (i32, i32) {
    %c0_i32 = arith.constant 0 : i32
    %c0_i32_0 = arith.constant 0 : i32
    %c0_i32_1 = arith.constant 0 : i32
    return %c0_i32, %c0_i32_0 : i32, i32
  }
  func.func @transform_3(%arg0: i32, %arg1: i32) -> (i32, i32) {
    %c0_i32 = arith.constant 0 : i32
    %c0_i32_0 = arith.constant 0 : i32
    %c0_i32_1 = arith.constant 0 : i32
    return %c0_i32, %c0_i32_0 : i32, i32
  }
  func.func @transform_4(%arg0: i32, %arg1: i32) -> (i32, i32, i32) {
    %c0_i32 = arith.constant 0 : i32
    %c0_i32_0 = arith.constant 0 : i32
    return %arg0, %c0_i32, %arg1 : i32, i32, i32
  }
}

module attributes {stable_mosaic.version = 11 : i64} {
  func.func @_upconv1d_kernel(%arg0: i32, %arg1: i32, %arg2: memref<2x4x6148xf32, #tpu.memory_space<vmem>>, %arg3: memref<8x20xf32, #tpu.memory_space<vmem>>, %arg4: memref<8x1xf32, #tpu.memory_space<vmem>>, %arg5: memref<2x8x2048xf32, #tpu.memory_space<vmem>>) attributes {dimension_semantics = [#tpu.dimension_semantics<parallel>, #tpu.dimension_semantics<parallel>], iteration_bounds = array<i64: 1, 3>, scalar_prefetch = 0 : i64, scratch_operands = 0 : i64, tpu.core_type = #tpu.core_type<tc>, window_params = [{transform_indices = @transform_0, window_bounds = array<i64: 2, 4, 6148>}, {pipeline_mode = #tpu.pipeline_mode<synchronous>, transform_indices = @transform_1, window_bounds = array<i64: 8, 20>}, {pipeline_mode = #tpu.pipeline_mode<synchronous>, transform_indices = @transform_2, window_bounds = array<i64: 8, 1>}, {transform_indices = @transform_3, window_bounds = array<i64: 2, 8, 2048>}]} {
    %c2048_i32 = arith.constant 2048 : i32
    %0 = arith.muli %arg1, %c2048_i32 : i32
    %1 = tpu.assume_multiple %0, 128 : i32
    %c0 = arith.constant 0 : index
    %c0_0 = arith.constant 0 : index
    %2 = vector.load %arg3[%c0, %c0_0] : memref<8x20xf32, #tpu.memory_space<vmem>>, vector<8x20xf32>
    %c0_1 = arith.constant 0 : index
    %c0_2 = arith.constant 0 : index
    %3 = vector.load %arg4[%c0_1, %c0_2] : memref<8x1xf32, #tpu.memory_space<vmem>>, vector<8x1xf32>
    %c0_3 = arith.constant 0 : index
    %c0_4 = arith.constant 0 : index
    %4 = arith.index_cast %1 : i32 to index
    %5 = vector.load %arg2[%c0_3, %c0_4, %4] : memref<2x4x6148xf32, #tpu.memory_space<vmem>>, vector<1x4x2052xf32>
    %6 = vector.shape_cast %5 : vector<1x4x2052xf32> to vector<4x2052xf32>
    %7 = vector.extract_strided_slice %6 {offsets = [0, 0], sizes = [4, 2048], strides = [1, 1]} : vector<4x2052xf32> to vector<4x2048xf32>
    %8 = vector.extract_strided_slice %6 {offsets = [0, 1], sizes = [4, 2048], strides = [1, 1]} : vector<4x2052xf32> to vector<4x2048xf32>
    %9 = vector.extract_strided_slice %6 {offsets = [0, 2], sizes = [4, 2048], strides = [1, 1]} : vector<4x2052xf32> to vector<4x2048xf32>
    %10 = vector.extract_strided_slice %6 {offsets = [0, 3], sizes = [4, 2048], strides = [1, 1]} : vector<4x2052xf32> to vector<4x2048xf32>
    %11 = vector.extract_strided_slice %6 {offsets = [0, 4], sizes = [4, 2048], strides = [1, 1]} : vector<4x2052xf32> to vector<4x2048xf32>
    %12 = tpu.concatenate %7, %8, %9, %10, %11 in 0 : vector<4x2048xf32>, vector<4x2048xf32>, vector<4x2048xf32>, vector<4x2048xf32>, vector<4x2048xf32> -> vector<20x2048xf32>
    %cst = arith.constant dense<0.000000e+00> : vector<8x2048xf32>
    %13 = tpu.matmul %2, %12, %cst {dimension_numbers = #tpu.dot_dimension_numbers<[1], [0], [0], [1], [0, 0, 1, 1], [], []>} : vector<8x20xf32>, vector<20x2048xf32>, vector<8x2048xf32> -> vector<8x2048xf32>
    %14 = vector.broadcast %3 : vector<8x1xf32> to vector<8x2048xf32>
    %15 = arith.addf %13, %14 : vector<8x2048xf32>
    %c0_5 = arith.constant 0 : index
    %c0_6 = arith.constant 0 : index
    %c0_7 = arith.constant 0 : index
    %16 = vector.load %arg5[%c0_5, %c0_6, %c0_7] : memref<2x8x2048xf32, #tpu.memory_space<vmem>>, vector<1x8x2048xf32>
    %17 = vector.shape_cast %16 : vector<1x8x2048xf32> to vector<8x2048xf32>
    %18 = vector.shape_cast %15 : vector<8x2048xf32> to vector<1x8x2048xf32>
    tpu.vector_store %arg5[%c0_5, %c0_6, %c0_7], %18 {strides = array<i32>} : memref<2x8x2048xf32, #tpu.memory_space<vmem>>, vector<1x8x2048xf32>,
    %c1 = arith.constant 1 : index
    %c0_8 = arith.constant 0 : index
    %19 = arith.index_cast %1 : i32 to index
    %20 = vector.load %arg2[%c1, %c0_8, %19] : memref<2x4x6148xf32, #tpu.memory_space<vmem>>, vector<1x4x2052xf32>
    %21 = vector.shape_cast %20 : vector<1x4x2052xf32> to vector<4x2052xf32>
    %22 = vector.extract_strided_slice %21 {offsets = [0, 0], sizes = [4, 2048], strides = [1, 1]} : vector<4x2052xf32> to vector<4x2048xf32>
    %23 = vector.extract_strided_slice %21 {offsets = [0, 1], sizes = [4, 2048], strides = [1, 1]} : vector<4x2052xf32> to vector<4x2048xf32>
    %24 = vector.extract_strided_slice %21 {offsets = [0, 2], sizes = [4, 2048], strides = [1, 1]} : vector<4x2052xf32> to vector<4x2048xf32>
    %25 = vector.extract_strided_slice %21 {offsets = [0, 3], sizes = [4, 2048], strides = [1, 1]} : vector<4x2052xf32> to vector<4x2048xf32>
    %26 = vector.extract_strided_slice %21 {offsets = [0, 4], sizes = [4, 2048], strides = [1, 1]} : vector<4x2052xf32> to vector<4x2048xf32>
    %27 = tpu.concatenate %22, %23, %24, %25, %26 in 0 : vector<4x2048xf32>, vector<4x2048xf32>, vector<4x2048xf32>, vector<4x2048xf32>, vector<4x2048xf32> -> vector<20x2048xf32>
    %cst_9 = arith.constant dense<0.000000e+00> : vector<8x2048xf32>
    %28 = tpu.matmul %2, %27, %cst_9 {dimension_numbers = #tpu.dot_dimension_numbers<[1], [0], [0], [1], [0, 0, 1, 1], [], []>} : vector<8x20xf32>, vector<20x2048xf32>, vector<8x2048xf32> -> vector<8x2048xf32>
    %29 = vector.broadcast %3 : vector<8x1xf32> to vector<8x2048xf32>
    %30 = arith.addf %28, %29 : vector<8x2048xf32>
    %c1_10 = arith.constant 1 : index
    %c0_11 = arith.constant 0 : index
    %c0_12 = arith.constant 0 : index
    %31 = vector.load %arg5[%c1_10, %c0_11, %c0_12] : memref<2x8x2048xf32, #tpu.memory_space<vmem>>, vector<1x8x2048xf32>
    %32 = vector.shape_cast %31 : vector<1x8x2048xf32> to vector<8x2048xf32>
    %33 = vector.shape_cast %30 : vector<8x2048xf32> to vector<1x8x2048xf32>
    tpu.vector_store %arg5[%c1_10, %c0_11, %c0_12], %33 {strides = array<i32>} : memref<2x8x2048xf32, #tpu.memory_space<vmem>>, vector<1x8x2048xf32>,
    return
  }
  func.func @transform_0(%arg0: i32, %arg1: i32) -> (i32, i32, i32) {
    %c0_i32 = arith.constant 0 : i32
    %c0_i32_0 = arith.constant 0 : i32
    %c0_i32_1 = arith.constant 0 : i32
    return %arg0, %c0_i32, %c0_i32_0 : i32, i32, i32
  }
  func.func @transform_1(%arg0: i32, %arg1: i32) -> (i32, i32) {
    %c0_i32 = arith.constant 0 : i32
    %c0_i32_0 = arith.constant 0 : i32
    %c0_i32_1 = arith.constant 0 : i32
    return %c0_i32, %c0_i32_0 : i32, i32
  }
  func.func @transform_2(%arg0: i32, %arg1: i32) -> (i32, i32) {
    %c0_i32 = arith.constant 0 : i32
    %c0_i32_0 = arith.constant 0 : i32
    %c0_i32_1 = arith.constant 0 : i32
    return %c0_i32, %c0_i32_0 : i32, i32
  }
  func.func @transform_3(%arg0: i32, %arg1: i32) -> (i32, i32, i32) {
    %c0_i32 = arith.constant 0 : i32
    %c0_i32_0 = arith.constant 0 : i32
    return %arg0, %c0_i32, %arg1 : i32, i32, i32
  }
}

</mosaic_0001>

<bundles_post_ra>
// kernel: tpu_custom_call.1
= control target key start
LH: loop header
LB: loop body
LE: loop exit
PB: predicated region body
PF: predicated region fallthrough
CT: control target
= control target key end

     0   :  { %8 = vsyncpa [#allocation3], 0  ;;  %s4049_s0 = inlined_call_operand.hbm [shape: f32[2,4,6148], index: 0, kind: input, shape index: {}]   ;;  %s4050_s1 = inlined_call_operand.vmem [shape: f32[8,20], index: 1, kind: input, shape index: {}]   ;;  %s4051_s2 = inlined_call_operand.vmem [shape: f32[8,1], index: 2, kind: input, shape index: {}]   ;;  %s4052_s3 = inlined_call_operand.hbm [shape: f32[2,8,6144], index: 3, kind: output, shape index: {}]  }
   0x1   :  { %9 = vsyncpa [#allocation4], 0 }
   0x2   :  { %11 = vsyncpa [#allocation4 + $0x1], 0  ;;  %s2543_s12 = smov 0   ;;  %s2545_s13 = smov 0  }
   0x3   :  { %s2547_s14 = smov 0   ;;  %s2549_s15 = smov 0  }
   0x4   :  { %s2551_s16 = smov 0   ;;  %s2553_s17 = smov 0  }
   0x5 LB: > { %s1970_s18 = sadd.s32 4294967295, %s2510_s17   ;;  %s1971_s19 = sadd.s32 4294967294, %s2510_s17   ;;  %s2510_s17 = sphi %s2553_s17, %s17_s17   ;;  %s2506_s16 = sphi %s2551_s16, %s4217_s16   ;;  %s2502_s15 = sphi %s2549_s15, %s4216_s15   ;;  %s2498_s14 = sphi %s2547_s14, %s4215_s14   ;;  %s2494_s13 = sphi %s2545_s13, %s4214_s13   ;;  %s2490_s12 = sphi %s2543_s12, %s4213_s12  }
   0x6   : > { %s26_s20 = sadd.s32 1, %s2506_s16  ;;  %s106_s21 = sadd.s32 1, %s2498_s14 }
   0x7   : > { %p27_p0 = scmp.ge.s32.totalorder %s26_s20, 3  ;;  %p116_p1 = scmp.ne.s32.totalorder %s2498_s14, %s2494_s13 }
   0x8   : > { %p117_p2 = scmp.eq.s32.totalorder %s1970_s18, 2  ;;  %p122_p3 = scmp.ne.s32.totalorder %s2494_s13, %s2490_s12 }
   0x9   : > { %s4219_s20 = smov (%p27_p0, %s26_s20), 0  ;;  %p123_p5 = scmp.eq.s32.totalorder %s1971_s19, 2 }
   0xa   : > { %p2583_p4 = por %p117_p2, %p116_p1  ;;  %s102_s23 = ssub.s32 %s2506_s16, %s4219_s20 }
   0xb   : > { %p1972_p6 = scmp.ge.s32.totalorder %s2510_s17, 1  ;;  %p104_p7 = scmp.eq.s32.totalorder %s102_s23, 0 }
   0xc   : > { %p2590_p8 = por %p123_p5, %p122_p3  ;;  %p130_p9 = scmp.lt.s32.totalorder %s2510_s17, 4 }
   0xd   : > { %s2596_s25 = scalar_select %p104_p7, %s2498_s14, %s106_s21  }
   0xe   : > { %p131_p10 = pnand %p1972_p6, %p130_p9  ;;  %p2089_p11 = scmp.eq.s32.totalorder %s1970_s18, 0 }
   0xf   : > { %s145_s28 = sshll.u32 %s4049_s0, 4  ;;  %s2512_s29 = smov [#allocation2]   ;;  %s146_s28 = int_to_ptr.hbm [resolvable:$true] %s145_s28 }
  0x10   : > { %p2081_p12 = pneg %p131_p10  ;;  %s147_s30 = sshll.u32 %s2512_s29, 4  ;;  %s148_s30 = int_to_ptr.vmem [resolvable:$true] %s147_s30 }
  0x11   : > { %s2513_s4 = smov 3136   ;;  %s2514_s5 = smov 196  }
  0x12   : > { %p2082_p13 = pnand %p2089_p11, %p2081_p12  ;;  %169 = sbr.rel (%p131_p10) target bundleno = 559 (0x22f), region = 32 }
  0x14   : > { %2084 = dma.hbm_to_vmem [thread:$0]  (!%p2082_p13), %s146_s28, 6272, %s148_s30, [#allocation3], %s2513_s4, %s2513_s4, %s2514_s5  }
  0x17   : > { %2481 = dma.done.wait (%p2089_p11), [#allocation3], 6272  }
  0x18   : > { %2483 = vsyncadd (%p2089_p11), [#allocation3], 4294961024  ;;  %s1977_s6 = sshll.u32 %s2502_s15, 11  ;;  %s2515_s10 = smov 127   ;;  %vm324_vm0 = vcmask 1039360   ;;  %vm420_vm1 = vcmask 1031168  }
  0x19   : > { %s195_s7 = sshra.s32 %s1977_s6, 7  ;;  %s2516_s11 = smov 126   ;;  %vm517_vm2 = vcmask 1022976   ;;  %vm630_vm3 = vcmask 1043456   ;;  %vm613_vm4 = vcmask 1014784   ;;  %vm668_vm5 = vcmask 162816  }
  0x1a   : > { %s1978_s8 = sshll.u32 %s195_s7, 2  ;;  %s2517_s18 = smov 125  }
  0x1b   : > { %s2602_s9 = scalar_lea.vmem [#allocation2], %s1978_s8  ;;  %s2519_s19 = smov 124  }
  0x1c   : > { %v2605_v0 = vld [vmem:[%s2602_s9 + $0x10] sm:$0xff]  ;;  %v2609_v1 = vld [vmem:[%s2602_s9] sm:$0xff]  ;;  %v2613_v2 = vld [vmem:[%s2602_s9 + $0x18] sm:$0xff]  ;;  %s186_s28 = sand.u32 1, %s2494_s13   ;;  %s2074_s4 = sshll.u32 %s2502_s15, 7 }
  0x1d   : > { %220 = vst [vmem:[#allocation1 + $0x20] ss:$2 sm:$0xff] %v2605_v0  ;;  %v2616_v3 = vld [vmem:[%s2602_s9 + $0x8] sm:$0xff]  ;;  %v2621_v4 = vld [vmem:[%s2602_s9 + $0x30] sm:$0xff]  ;;  %v2624_v5 = vld [vmem:[%s2602_s9 + $0x20] sm:$0xff]  ;;  %s3818_s29 = sshll.u32 %s186_s28, 8  ;;  %s1886_s7 = scalar_lea.hbm %s4052_s3, %s2074_s4 }
  0x1e   : > { %216 = vst [vmem:[#allocation1] ss:$2 sm:$0xff] %v2609_v1  ;;  %v2634_v9 = vld [vmem:[%s2602_s9 + $0x38] sm:$0xff]  ;;  %v2644_v13 = vld [vmem:[%s2602_s9 + $0x28] sm:$0xff]  ;;  %v2679_v35 = vld [vmem:[%s2602_s9 + $0x40] sm:$0xf] }
  0x1f   : > { %222 = vst [vmem:[#allocation1 + $0x30] ss:$2 sm:$0xff] %v2613_v2  ;;  %s3867_s30 = scalar_lea.vmem [#allocation5], %s3818_s29  ;;  %s1872_s15 = scalar_lea.sflag [#allocation4], %s186_s28 }
  0x20   : > { %218 = vst [vmem:[#allocation1 + $0x10] ss:$2 sm:$0xff] %v2616_v3  ;;  %s1887_s8 = sshll.u32 %s3867_s30, 4  ;;  %s2448_s21 = scalar_lea.hbm %s4052_s3, 768  ;;  %s1888_s8 = int_to_ptr.vmem [resolvable:$true] %s1887_s8 }
  0x24   : > { %v2626_v6 = vld.sshfl [vmem:[#allocation1 + $0x20] sm:$0xff pattern:$0x75316420]  ;;  %v2628_v7 = vld.sshfl [vmem:[#allocation1 + $0x28] sm:$0xff pattern:$0x75316420] }
  0x25   : > { %4084 = vst [vmem:[#allocation8_spill] sm:$0xff] %v2626_v6  ;;  %v2631_v8 = vld.sshfl [vmem:[#allocation1] sm:$0xff pattern:$0x75316420] }
  0x26   : > { %4085 = vst [vmem:[#allocation9_spill] sm:$0xff] %v2628_v7  ;;  %v2636_v10 = vld.sshfl [vmem:[#allocation1 + $0x8] sm:$0xff pattern:$0x75316420] }
  0x27   : > { %233 = vst [vmem:[#allocation1 + $0x20] ss:$2 sm:$0xff] %v2621_v4  ;;  %v2638_v11 = vld.sshfl [vmem:[#allocation1 + $0x30] sm:$0xff pattern:$0x75316420] }
  0x28   : > { %4086 = vst [vmem:[#allocation10_spill] sm:$0xff] %v2631_v8  ;;  %v2641_v12 = vld.sshfl [vmem:[#allocation1 + $0x38] sm:$0xff pattern:$0x75316420] }
  0x29   : > { %4087 = vst [vmem:[#allocation11_spill] sm:$0xff] %v2636_v10  ;;  %v2647_v14 = vld.sshfl [vmem:[#allocation1 + $0x10] sm:$0xff pattern:$0x75316420] }
  0x2a   : > { %231 = vst [vmem:[#allocation1] ss:$2 sm:$0xff] %v2624_v5  ;;  %v2649_v15 = vld.sshfl [vmem:[#allocation1 + $0x18] sm:$0xff pattern:$0x75316420] }
  0x2b   : > { %234 = vst [vmem:[#allocation1 + $0x30] ss:$2 sm:$0xff] %v2634_v9 }
  0x2c   : > { %232 = vst [vmem:[#allocation1 + $0x10] ss:$2 sm:$0xff] %v2644_v13 }
  0x2e   : > { %v2652_v16 = vld.sshfl [vmem:[#allocation1 + $0x20] sm:$0xff pattern:$0x75316420]  ;;  %v2654_v17 = vld.sshfl [vmem:[#allocation1 + $0x28] sm:$0xff pattern:$0x75316420] }
  0x2f   : > { %4088 = vst [vmem:[#allocation12_spill] sm:$0xff] %v2652_v16 }
  0x30   : > { %4089 = vst [vmem:[#allocation13_spill] sm:$0xff] %v2654_v17 }
  0x31   : > { %265 = vst [vmem:[#allocation1 + $0x21] ss:$2 sm:$0xff] %v2605_v0  ;;  %v2657_v18 = vld.sshfl [vmem:[#allocation1] sm:$0xff pattern:$0x75316420] }
  0x32   : > { %4090 = vst [vmem:[#allocation14_spill] sm:$0xff] %v2657_v18  ;;  %v2659_v19 = vld.sshfl [vmem:[#allocation1 + $0x8] sm:$0xff pattern:$0x75316420] }
  0x33   : > { %4091 = vst [vmem:[#allocation15_spill] sm:$0xff] %v2659_v19  ;;  %v2662_v20 = vld.sshfl [vmem:[#allocation1 + $0x30] sm:$0xff pattern:$0x75316420] }
  0x34   : > { %261 = vst [vmem:[#allocation1 + $0x1] ss:$2 sm:$0xff] %v2609_v1  ;;  %v2664_v21 = vld.sshfl [vmem:[#allocation1 + $0x38] sm:$0xff pattern:$0x75316420] }
  0x35   : > { %4092 = vst [vmem:[#allocation16_spill] sm:$0xff] %v2664_v21  ;;  %v2667_v22 = vld.sshfl [vmem:[#allocation1 + $0x10] sm:$0xff pattern:$0x75316420] }
  0x36   : > { %267 = vst [vmem:[#allocation1 + $0x31] ss:$2 sm:$0xff] %v2613_v2  ;;  %v2669_v23 = vld.sshfl [vmem:[#allocation1 + $0x18] sm:$0xff pattern:$0x75316420] }
  0x37   : > { %263 = vst [vmem:[#allocation1 + $0x11] ss:$2 sm:$0xff] %v2616_v3 }
  0x38   : > { %v272_v24 = vld.sshfl [vmem:[#allocation1 + $0x20] sm:$0xff pattern:$0x75316420]  ;;  %v273_v25 = vld.sshfl [vmem:[#allocation1 + $0x28] sm:$0xff pattern:$0x75316420] }
  0x39   : > { %v2161_v26 = vpack.i.bf16 %v273_v25, %v272_v24  ;;  %278 = vst [vmem:[#allocation1 + $0x21] ss:$2 sm:$0xff] %v2621_v4 }
  0x3b   : > { %v268_v27 = vld.sshfl [vmem:[#allocation1] sm:$0xff pattern:$0x75316420]  ;;  %v269_v28 = vld.sshfl [vmem:[#allocation1 + $0x8] sm:$0xff pattern:$0x75316420]  ;;  %2162 = vrot.lane.b32.xlu1 %v2161_v26, %s2515_s10 }
  0x3c   : > { %v2151_v29 = vpack.i.bf16 %v269_v28, %v268_v27  ;;  %276 = vst [vmem:[#allocation1 + $0x1] ss:$2 sm:$0xff] %v2624_v5 }
  0x3d   : > { %v274_v30 = vld.sshfl [vmem:[#allocation1 + $0x30] sm:$0xff pattern:$0x75316420]  ;;  %v275_v31 = vld.sshfl [vmem:[#allocation1 + $0x38] sm:$0xff pattern:$0x75316420] }
  0x3e   : > { %2152 = vrot.lane.b32.xlu0 %v2151_v29, %s2515_s10  ;;  %279 = vst [vmem:[#allocation1 + $0x31] ss:$2 sm:$0xff] %v2634_v9  ;;  %v270_v32 = vld.sshfl [vmem:[#allocation1 + $0x10] sm:$0xff pattern:$0x75316420]  ;;  %v2166_v34 = vpack.i.bf16 %v275_v31, %v274_v30 }
  0x3f   : > { %v271_v33 = vld.sshfl [vmem:[#allocation1 + $0x18] sm:$0xff pattern:$0x75316420] }
  0x40   : > { %277 = vst [vmem:[#allocation1 + $0x11] ss:$2 sm:$0xff] %v2644_v13  ;;  %v284_v36 = vld.sshfl [vmem:[#allocation1 + $0x20] sm:$0xff pattern:$0x75316420]  ;;  %v2156_v38 = vpack.i.bf16 %v271_v33, %v270_v32 }
  0x41   : > { %v285_v37 = vld.sshfl [vmem:[#allocation1 + $0x28] sm:$0xff pattern:$0x75316420] }
  0x42   : > { %361 = vst [vmem:[#allocation1 + $0x20] ss:$2 sm:$0xff] %v2605_v0  ;;  %v2181_v49 = vpack.i.bf16 %v285_v37, %v284_v36 }
  0x43   : > { %v280_v39 = vld.sshfl [vmem:[#allocation1] sm:$0xff pattern:$0x75316420]  ;;  %v281_v40 = vld.sshfl [vmem:[#allocation1 + $0x8] sm:$0xff pattern:$0x75316420]  ;;  %2167 = vrot.lane.b32.xlu1 %v2166_v34, %s2515_s10 }
  0x44   : > { %v2171_v41 = vpack.i.bf16 %v281_v40, %v280_v39  ;;  %288 = vst [vmem:[#allocation1 + $0x1] ss:$2 sm:$0xff] %v2679_v35 }
  0x45   : > { %v286_v42 = vld.sshfl [vmem:[#allocation1 + $0x30] sm:$0xff pattern:$0x75316420]  ;;  %v287_v43 = vld.sshfl [vmem:[#allocation1 + $0x38] sm:$0xff pattern:$0x75316420] }
  0x46   : > { %2157 = vrot.lane.b32.xlu0 %v2156_v38, %s2515_s10  ;;  %2172 = vrot.lane.b32.xlu2 %v2171_v41, %s2515_s10  ;;  %363 = vst [vmem:[#allocation1 + $0x30] ss:$2 sm:$0xff] %v2613_v2  ;;  %v2186_v46 = vpack.i.bf16 %v287_v43, %v286_v42 }
  0x47   : > { %v282_v44 = vld.sshfl [vmem:[#allocation1 + $0x10] sm:$0xff pattern:$0x75316420]  ;;  %v283_v45 = vld.sshfl [vmem:[#allocation1 + $0x18] sm:$0xff pattern:$0x75316420] }
  0x48   : > { %359 = vst [vmem:[#allocation1 + $0x10] ss:$2 sm:$0xff] %v2616_v3  ;;  %v2176_v50 = vpack.i.bf16 %v283_v45, %v282_v44 }
  0x49   : > { %v368_v47 = vld.sshfl [vmem:[#allocation1 + $0x20] sm:$0xff pattern:$0x75316420]  ;;  %v369_v48 = vld.sshfl [vmem:[#allocation1 + $0x28] sm:$0xff pattern:$0x75316420] }
  0x4a   : > { %374 = vst [vmem:[#allocation1 + $0x20] ss:$2 sm:$0xff] %v2621_v4  ;;  %v2196_v60 = vpack.i.bf16 %v369_v48, %v368_v47 }
  0x4b   : > { %v2689_v51 = vld.sshfl [vmem:[#allocation1] sm:$0xff pattern:$0x75316420]  ;;  %2187 = vrot.lane.b32.xlu1 %v2186_v46, %s2515_s10 }
  0x4c   : > { %357 = vst [vmem:[#allocation1] ss:$2 sm:$0xff] %v2609_v1 }
  0x4d   : > { %v370_v52 = vld.sshfl [vmem:[#allocation1 + $0x30] sm:$0xff pattern:$0x75316420]  ;;  %v371_v53 = vld.sshfl [vmem:[#allocation1 + $0x38] sm:$0xff pattern:$0x75316420] }
  0x4e   : > { %2182 = vrot.lane.b32.xlu0 %v2181_v49, %s2515_s10  ;;  %2177 = vrot.lane.b32.xlu2 %v2176_v50, %s2515_s10  ;;  %375 = vst [vmem:[#allocation1 + $0x30] ss:$2 sm:$0xff] %v2634_v9  ;;  %v2201_v59 = vpack.i.bf16 %v371_v53, %v370_v52 }
  0x4f   : > { %v366_v54 = vld.sshfl [vmem:[#allocation1 + $0x10] sm:$0xff pattern:$0x75316420]  ;;  %v367_v55 = vld.sshfl [vmem:[#allocation1 + $0x18] sm:$0xff pattern:$0x75316420] }
  0x50   : > { %v2191_v56 = vpack.i.bf16 %v367_v55, %v366_v54  ;;  %373 = vst [vmem:[#allocation1 + $0x10] ss:$2 sm:$0xff] %v2644_v13 }
  0x51   : > { %v380_v57 = vld.sshfl [vmem:[#allocation1 + $0x20] sm:$0xff pattern:$0x75316420]  ;;  %v381_v58 = vld.sshfl [vmem:[#allocation1 + $0x28] sm:$0xff pattern:$0x75316420] }
  0x52   : > { %458 = vst [vmem:[#allocation1 + $0x21] ss:$2 sm:$0xff] %v2605_v0  ;;  %v2216_v43 = vpack.i.bf16 %v381_v58, %v380_v57  ;;  %v2518_v57 = vmov 0  }
  0x53   : > { %v364_v61 = vld.sshfl [vmem:[#allocation1] sm:$0xff pattern:$0x75316420]  ;;  %v365_v62 = vld.sshfl [vmem:[#allocation1 + $0x8] sm:$0xff pattern:$0x75316420]  ;;  %2192 = vrot.lane.b32.xlu1 %v2191_v56, %s2516_s11  ;;  %2271 = vset.pattern.permute.xlu2 %v2518_v57 }
  0x54   : > { %372 = vst [vmem:[#allocation1] ss:$2 sm:$0xff] %v2624_v5  ;;  %v2206_v31 = vpack.i.bf16 %v365_v62, %v364_v61  ;;  %v2723_v56 = vld [vmem:[%s2602_s9 + $0xd4] sm:$0xff]  ;;  %2397 = vset.pattern.permute.xlu0 %v2518_v57  ;;  %v194_v57 = vld [vmem:[%s4051_s2] sm:$0xff] }
  0x55   : > { %v382_v63 = vld.sshfl [vmem:[#allocation1 + $0x30] sm:$0xff pattern:$0x75316420]  ;;  %v383_v24 = vld.sshfl [vmem:[#allocation1 + $0x38] sm:$0xff pattern:$0x75316420] }
  0x56   : > { %2202 = vrot.lane.b32.xlu0 %v2201_v59, %s2516_s11  ;;  %2197 = vrot.lane.b32.xlu2 %v2196_v60, %s2516_s11  ;;  %460 = vst [vmem:[#allocation1 + $0x31] ss:$2 sm:$0xff] %v2613_v2  ;;  %v2221_v27 = vpack.i.bf16 %v383_v24, %v382_v63  ;;  %v2735_v63 = vld [vmem:[%s2602_s9 + $0xcc] sm:$0xff] }
  0x57   : > { %v378_v25 = vld.sshfl [vmem:[#allocation1 + $0x10] sm:$0xff pattern:$0x75316420]  ;;  %v379_v26 = vld.sshfl [vmem:[#allocation1 + $0x18] sm:$0xff pattern:$0x75316420] }
  0x58   : > { %456 = vst [vmem:[#allocation1 + $0x11] ss:$2 sm:$0xff] %v2616_v3  ;;  %v2211_v30 = vpack.i.bf16 %v379_v26, %v378_v25 }
  0x59   : > { %v465_v28 = vld.sshfl [vmem:[#allocation1 + $0x20] sm:$0xff pattern:$0x75316420]  ;;  %v466_v29 = vld.sshfl [vmem:[#allocation1 + $0x28] sm:$0xff pattern:$0x75316420] }
  0x5a   : > { %471 = vst [vmem:[#allocation1 + $0x21] ss:$2 sm:$0xff] %v2621_v4  ;;  %v2236_v42 = vpack.i.bf16 %v466_v29, %v465_v28  ;;  %v2747_v28 = vld [vmem:[%s2602_s9 + $0xdc] sm:$0xff] }
  0x5b   : > { %v376_v32 = vld.sshfl [vmem:[#allocation1] sm:$0xff pattern:$0x75316420]  ;;  %2222 = vrot.lane.b32.xlu1 %v2221_v27, %s2516_s11  ;;  %v377_v33 = vld.sshfl [vmem:[#allocation1 + $0x8] sm:$0xff pattern:$0x75316420] }
  0x5c   : > { %384 = vst [vmem:[#allocation1] ss:$2 sm:$0xff] %v2679_v35  ;;  %v2226_v38 = vpack.i.bf16 %v377_v33, %v376_v32  ;;  %v2759_v33 = vld [vmem:[%s2602_s9 + $0xec] sm:$0xff] }
  0x5d   : > { %v467_v34 = vld.sshfl [vmem:[#allocation1 + $0x30] sm:$0xff pattern:$0x75316420]  ;;  %v468_v39 = vld.sshfl [vmem:[#allocation1 + $0x38] sm:$0xff pattern:$0x75316420] }
  0x5e   : > { %2212 = vrot.lane.b32.xlu2 %v2211_v30, %s2516_s11  ;;  %2207 = vrot.lane.b32.xlu0 %v2206_v31, %s2516_s11  ;;  %472 = vst [vmem:[#allocation1 + $0x31] ss:$2 sm:$0xff] %v2634_v9  ;;  %v2241_v50 = vpack.i.bf16 %v468_v39, %v467_v34 }
  0x5f   : > { %v463_v36 = vld.sshfl [vmem:[#allocation1 + $0x10] sm:$0xff pattern:$0x75316420]  ;;  %v464_v37 = vld.sshfl [vmem:[#allocation1 + $0x18] sm:$0xff pattern:$0x75316420] }
  0x60   : > { %470 = vst [vmem:[#allocation1 + $0x11] ss:$2 sm:$0xff] %v2644_v13 }
  0x61   : > { %v477_v40 = vld.sshfl [vmem:[#allocation1 + $0x20] sm:$0xff pattern:$0x75316420]  ;;  %v478_v41 = vld.sshfl [vmem:[#allocation1 + $0x28] sm:$0xff pattern:$0x75316420] }
  0x62   : > { %554 = vst [vmem:[#allocation1 + $0x20] ss:$2 sm:$0xff] %v2605_v0  ;;  %v2231_v0 = vpack.i.bf16 %v464_v37, %v463_v36  ;;  %v2251_v60 = vpack.i.bf16 %v478_v41, %v477_v40 }
  0x63   : > { %2227 = vrot.lane.b32.xlu1 %v2226_v38, %s2516_s11  ;;  %v2713_v44 = vld.sshfl [vmem:[#allocation1] sm:$0xff pattern:$0x75316420] }
  0x64   : > { %454 = vst [vmem:[#allocation1 + $0x1] ss:$2 sm:$0xff] %v2609_v1  ;;  %v2772_v38 = vld [vmem:[%s2602_s9 + $0xfc] sm:$0xff] }
  0x65   : > { %v479_v52 = vld.sshfl [vmem:[#allocation1 + $0x30] sm:$0xff pattern:$0x75316420]  ;;  %v480_v53 = vld.sshfl [vmem:[#allocation1 + $0x38] sm:$0xff pattern:$0x75316420] }
  0x66   : > { %2237 = vrot.lane.b32.xlu2 %v2236_v42, %s2517_s18  ;;  %2217 = vrot.lane.b32.xlu0 %v2216_v43, %s2516_s11  ;;  %556 = vst [vmem:[#allocation1 + $0x30] ss:$2 sm:$0xff] %v2613_v2  ;;  %v2256_v2 = vpack.i.bf16 %v480_v53, %v479_v52 }
  0x67   : > { %v475_v45 = vld.sshfl [vmem:[#allocation1 + $0x10] sm:$0xff pattern:$0x75316420]  ;;  %v476_v46 = vld.sshfl [vmem:[#allocation1 + $0x18] sm:$0xff pattern:$0x75316420] }
  0x68   : > { %552 = vst [vmem:[#allocation1 + $0x10] ss:$2 sm:$0xff] %v2616_v3  ;;  %v2246_v49 = vpack.i.bf16 %v476_v46, %v475_v45 }
  0x69   : > { %v561_v47 = vld.sshfl [vmem:[#allocation1 + $0x20] sm:$0xff pattern:$0x75316420]  ;;  %v562_v48 = vld.sshfl [vmem:[#allocation1 + $0x28] sm:$0xff pattern:$0x75316420] }
  0x6a   : > { %567 = vst [vmem:[#allocation1 + $0x20] ss:$2 sm:$0xff] %v2621_v4 }
  0x6b   : > { %2232 = vrot.lane.b32.xlu1 %v2231_v0, %s2517_s18  ;;  %v461_v54 = vld.sshfl [vmem:[#allocation1] sm:$0xff pattern:$0x75316420]  ;;  %v462_v55 = vld.sshfl [vmem:[#allocation1 + $0x8] sm:$0xff pattern:$0x75316420] }
  0x6c   : > { %469 = vst [vmem:[#allocation1 + $0x1] ss:$2 sm:$0xff] %v2624_v5  ;;  %v2261_v30 = vpack.i.bf16 %v462_v55, %v461_v54 }
  0x6d   : > { %v563_v61 = vld.sshfl [vmem:[#allocation1 + $0x30] sm:$0xff pattern:$0x75316420]  ;;  %v564_v62 = vld.sshfl [vmem:[#allocation1 + $0x38] sm:$0xff pattern:$0x75316420] }
  0x6e   : > { %2247 = vrot.lane.b32.xlu2 %v2246_v49, %s2517_s18  ;;  %2242 = vrot.lane.b32.xlu0 %v2241_v50, %s2517_s18  ;;  %568 = vst [vmem:[#allocation1 + $0x30] ss:$2 sm:$0xff] %v2634_v9 }
  0x6f   : > { %v559_v3 = vld.sshfl [vmem:[#allocation1 + $0x10] sm:$0xff pattern:$0x75316420]  ;;  %v560_v4 = vld.sshfl [vmem:[#allocation1 + $0x18] sm:$0xff pattern:$0x75316420] }
  0x70   : > { %566 = vst [vmem:[#allocation1 + $0x10] ss:$2 sm:$0xff] %v2644_v13  ;;  %v2740_v13 = vld [vmem:[%s2602_s9 + $0xf4] sm:$0xff] }
  0x71   : > { %v2729_v58 = vld.sshfl [vmem:[#allocation1 + $0x20] sm:$0xff pattern:$0x75316420]  ;;  %v2731_v59 = vld.sshfl [vmem:[#allocation1 + $0x28] sm:$0xff pattern:$0x75316420] }
  0x72   : > { %1064 = vst [vmem:[#allocation1 + $0x20] ss:$2 sm:$0xff] %v2723_v56 }
  0x73   : > { %2257 = vrot.lane.b32.xlu1 %v2256_v2, %s2517_s18  ;;  %v473_v24 = vld.sshfl [vmem:[#allocation1] sm:$0xff pattern:$0x75316420]  ;;  %v474_v25 = vld.sshfl [vmem:[#allocation1 + $0x8] sm:$0xff pattern:$0x75316420] }
  0x74   : > { %481 = vst [vmem:[#allocation1 + $0x1] ss:$2 sm:$0xff] %v2679_v35  ;;  %v2266_v0 = vpack.i.bf16 %v474_v25, %v473_v24 }
  0x75   : > { %v575_v31 = vld.sshfl [vmem:[#allocation1 + $0x30] sm:$0xff pattern:$0x75316420]  ;;  %v2754_v32 = vld.sshfl [vmem:[#allocation1 + $0x38] sm:$0xff pattern:$0x75316420] }
  0x76   : > { %583 = vrot.lane.b32.xlu2 %v559_v3, %s2519_s19  ;;  %2252 = vrot.lane.b32.xlu0 %v2251_v60, %s2517_s18  ;;  %1066 = vst [vmem:[#allocation1 + $0x30] ss:$2 sm:$0xff] %v2747_v28 }
  0x77   : > { %v571_v26 = vld.sshfl [vmem:[#allocation1 + $0x10] sm:$0xff pattern:$0x75316420]  ;;  %v572_v27 = vld.sshfl [vmem:[#allocation1 + $0x18] sm:$0xff pattern:$0x75316420] }
  0x78   : > { %1062 = vst [vmem:[#allocation1 + $0x10] ss:$2 sm:$0xff] %v2735_v63 }
  0x79   : > { %v2749_v9 = vld.sshfl [vmem:[#allocation1 + $0x20] sm:$0xff pattern:$0x75316420]  ;;  %v2751_v29 = vld.sshfl [vmem:[#allocation1 + $0x28] sm:$0xff pattern:$0x75316420] }
  0x7a   : > { %4093 = vst [vmem:[#allocation17_spill] sm:$0xff] %v2749_v9 }
  0x7b   : > { %4094 = vst [vmem:[#allocation18_spill] sm:$0xff] %v2751_v29  ;;  %587 = vrot.lane.b32.xlu1 %v561_v47, %s2519_s19  ;;  %v2761_v34 = vld.sshfl [vmem:[#allocation1] sm:$0xff pattern:$0x75316420] }
  0x7c   : > { %1077 = vst [vmem:[#allocation1 + $0x20] ss:$2 sm:$0xff] %v2740_v13 }
  0x7d   : > { %550 = vst [vmem:[#allocation1] ss:$2 sm:$0xff] %v2609_v1  ;;  %v2779_v41 = vld.sshfl [vmem:[#allocation1 + $0x30] sm:$0xff pattern:$0x75316420] }
  0x7e   : > { %589 = vrot.lane.b32.xlu2 %v562_v48, %s2519_s19  ;;  %2262 = vrot.lane.b32.xlu0 %v2261_v30, %s2517_s18  ;;  %4099 = vst [vmem:[#allocation23_spill] sm:$0xff] %v2779_v41  ;;  %v2781_v42 = vld.sshfl [vmem:[#allocation1 + $0x38] sm:$0xff pattern:$0x75316420] }
  0x7f   : > { %v2766_v36 = vld.sshfl [vmem:[#allocation1 + $0x10] sm:$0xff pattern:$0x75316420]  ;;  %v2768_v37 = vld.sshfl [vmem:[#allocation1 + $0x18] sm:$0xff pattern:$0x75316420] }
  0x80   : > { %4095 = vst [vmem:[#allocation19_spill] sm:$0xff] %v2766_v36 }
  0x81   : > { %4096 = vst [vmem:[#allocation20_spill] sm:$0xff] %v2768_v37 }
  0x82   : > { %1076 = vst [vmem:[#allocation1 + $0x10] ss:$2 sm:$0xff] %v2759_v33 }
  0x83   : > { %v2774_v39 = vld.sshfl [vmem:[#allocation1 + $0x20] sm:$0xff pattern:$0x75316420]  ;;  %v2776_v40 = vld.sshfl [vmem:[#allocation1 + $0x28] sm:$0xff pattern:$0x75316420]  ;;  %593 = vrot.lane.b32.xlu1 %v564_v62, %s2519_s19 }
  0x84   : > { %4097 = vst [vmem:[#allocation21_spill] sm:$0xff] %v2774_v39  ;;  %v558_v1 = vld.sshfl [vmem:[#allocation1 + $0x8] sm:$0xff pattern:$0x75316420] }
  0x85   : > { %4098 = vst [vmem:[#allocation22_spill] sm:$0xff] %v2776_v40  ;;  %v2785_v43 = vld.sshfl [vmem:[#allocation1] sm:$0xff pattern:$0x75316420] }
  0x86   : > { %1109 = vst [vmem:[#allocation1 + $0x21] ss:$2 sm:$0xff] %v2723_v56  ;;  %601 = vrot.lane.b32.xlu2 %v572_v27, %s2519_s19  ;;  %585 = vrot.lane.b32.xlu0 %v560_v4, %s2519_s19  ;;  %v2819_v4 = vld [vmem:[%s2602_s9 + $0xc4] sm:$0xff] }
  0x87   : > { %4100 = vst [vmem:[#allocation24_spill] sm:$0xff] %v2781_v42  ;;  %v2846_v27 = vld [vmem:[%s2602_s9 + $0xe4] sm:$0xff] }
  0x88   : > { %1078 = vst [vmem:[#allocation1 + $0x30] ss:$2 sm:$0xff] %v2772_v38 }
  0x89   : > { %565 = vst [vmem:[#allocation1] ss:$2 sm:$0xff] %v2624_v5  ;;  %v2790_v45 = vld.sshfl [vmem:[#allocation1 + $0x10] sm:$0xff pattern:$0x75316420] }
  0x8a   : > { %4101 = vst [vmem:[#allocation25_spill] sm:$0xff] %v2790_v45  ;;  %v2792_v46 = vld.sshfl [vmem:[#allocation1 + $0x18] sm:$0xff pattern:$0x75316420] }
  0x8b   : > { %4102 = vst [vmem:[#allocation26_spill] sm:$0xff] %v2792_v46  ;;  %2267 = vrot.lane.b32.xlu1 %v2266_v0, %s2517_s18 }
  0x8c   : > { %1107 = vst [vmem:[#allocation1 + $0x11] ss:$2 sm:$0xff] %v2735_v63 }
  0x8d   : > { %v2795_v47 = vld.sshfl [vmem:[#allocation1 + $0x28] sm:$0xff pattern:$0x75316420]  ;;  %v2797_v48 = vld.sshfl [vmem:[#allocation1 + $0x20] sm:$0xff pattern:$0x75316420] }
  0x8e   : > { %1122 = vst [vmem:[#allocation1 + $0x21] ss:$2 sm:$0xff] %v2740_v13  ;;  %607 = vrot.lane.b32.xlu2 %v575_v31, %s2519_s19  ;;  %591 = vrot.lane.b32.xlu0 %v563_v61, %s2519_s19 }
  0x8f   : > { %v2800_v49 = vld.sshfl [vmem:[#allocation1 + $0x30] sm:$0xff pattern:$0x75316420]  ;;  %v2802_v50 = vld.sshfl [vmem:[#allocation1 + $0x38] sm:$0xff pattern:$0x75316420] }
  0x90   : > { %4103 = vst [vmem:[#allocation27_spill] sm:$0xff] %v2800_v49  ;;  %v569_v5 = vld.sshfl [vmem:[#allocation1] sm:$0xff pattern:$0x75316420] }
  0x91   : > { %4104 = vst [vmem:[#allocation28_spill] sm:$0xff] %v2802_v50  ;;  %v2806_v52 = vld.sshfl [vmem:[#allocation1 + $0x8] sm:$0xff pattern:$0x75316420] }
  0x92   : > { %1111 = vst [vmem:[#allocation1 + $0x31] ss:$2 sm:$0xff] %v2747_v28 }
  0x93   : > { %577 = vst [vmem:[#allocation1] ss:$2 sm:$0xff] %v2679_v35  ;;  %v1114_v53 = vld.sshfl [vmem:[#allocation1 + $0x10] sm:$0xff pattern:$0x75316420]  ;;  %599 = vrot.lane.b32.xlu1 %v571_v26, %s2519_s19 }
  0x94   : > { %v2811_v54 = vld.sshfl [vmem:[#allocation1 + $0x18] sm:$0xff pattern:$0x75316420]  ;;  %v2272_v26 = vpack.i.bf16 %v1114_v53, %v2689_v51 }
  0x95   : > { %1121 = vst [vmem:[#allocation1 + $0x11] ss:$2 sm:$0xff] %v2759_v33  ;;  %v2814_v55 = vld.sshfl [vmem:[#allocation1 + $0x20] sm:$0xff pattern:$0x75316420] }
  0x96   : > { %v2816_v3 = vld.sshfl [vmem:[#allocation1 + $0x28] sm:$0xff pattern:$0x75316420]  ;;  %603 = vrot.lane.b32.xlu0 %v2729_v58, %s2519_s19  ;;  %665 = vperm.xlu2 %2271, %v194_v57  }
  0x97   : > { %4105 = vst [vmem:[#allocation29_spill] sm:$0xff] %v2816_v3 }
  0x98   : > { %1204 = vst [vmem:[#allocation1 + $0x20] ss:$2 sm:$0xff] %v2723_v56 }
  0x99   : > { %v2825_v2 = vld.sshfl [vmem:[#allocation1 + $0x30] sm:$0xff pattern:$0x75316420]  ;;  %v2827_v35 = vld.sshfl [vmem:[#allocation1 + $0x38] sm:$0xff pattern:$0x75316420] }
  0x9a   : > { %1123 = vst [vmem:[#allocation1 + $0x31] ss:$2 sm:$0xff] %v2772_v38  ;;  %v578_v60 = vld.sshfl [vmem:[#allocation1] sm:$0xff pattern:$0x75316420] }
  0x9b   : > { %1060 = vst [vmem:[#allocation1] ss:$2 sm:$0xff] %v2819_v4  ;;  %605 = vrot.lane.b32.xlu1 %v2731_v59, %s2519_s19 }
  0x9c   : > { %v2834_v61 = vld.sshfl [vmem:[#allocation1 + $0x10] sm:$0xff pattern:$0x75316420]  ;;  %v2836_v62 = vld.sshfl [vmem:[#allocation1 + $0x18] sm:$0xff pattern:$0x75316420] }
  0x9d   : > { %1202 = vst [vmem:[#allocation1 + $0x10] ss:$2 sm:$0xff] %v2735_v63 }
  0x9e   : > { %609 = vrot.lane.b32.xlu0 %v2754_v32, %s2519_s19  ;;  %2273 = vrot.lane.b32.xlu2 %v2272_v26, %s2515_s10 }
  0x9f   : > { %v2839_v24 = vld.sshfl [vmem:[#allocation1 + $0x20] sm:$0xff pattern:$0x75316420]  ;;  %v2841_v25 = vld.sshfl [vmem:[#allocation1 + $0x28] sm:$0xff pattern:$0x75316420] }
  0xa0   : > { %1217 = vst [vmem:[#allocation1 + $0x20] ss:$2 sm:$0xff] %v2740_v13  ;;  %v2865_v57 = vpop.permute.xlu2 %2172 }
  0xa1   : > { %v2848_v58 = vld.sshfl [vmem:[#allocation1 + $0x30] sm:$0xff pattern:$0x75316420]  ;;  %v2850_v30 = vld.sshfl [vmem:[#allocation1 + $0x38] sm:$0xff pattern:$0x75316420]  ;;  %v4113_v42 = vunpack.i.h.bf16 %v2865_v57 }
  0xa2   : > { %4106 = vst [vmem:[#allocation30_spill] sm:$0xff] %v2848_v58  ;;  %v2855_v31 = vld.sshfl [vmem:[#allocation1] sm:$0xff pattern:$0x75316420] }
  0xa3   : > { %4107 = vst [vmem:[#allocation31_spill] sm:$0xff] %v2850_v30  ;;  %v2857_v0 = vld.sshfl [vmem:[#allocation1 + $0x8] sm:$0xff pattern:$0x75316420]  ;;  %581 = vrot.lane.b32.xlu1 %v558_v1, %s2519_s19 }
  0xa4   : > { %1206 = vst [vmem:[#allocation1 + $0x30] ss:$2 sm:$0xff] %v2747_v28  ;;  %v1209_v51 = vld.sshfl [vmem:[#allocation1 + $0x10] sm:$0xff pattern:$0x75316420] }
  0xa5   : > { %4108 = vst [vmem:[#allocation32_spill] sm:$0xff] %v2855_v31  ;;  %v2863_v53 = vld.sshfl [vmem:[#allocation1 + $0x18] sm:$0xff pattern:$0x75316420]  ;;  %v2287_v17 = vpack.i.bf16 %v1209_v51, %v2713_v44 }
  0xa6   : > { %4109 = vst [vmem:[#allocation33_spill] sm:$0xff] %v2857_v0  ;;  %579 = vrot.lane.b32.xlu0 %v2785_v43, %s2519_s19  ;;  %595 = vrot.lane.b32.xlu2 %v569_v5, %s2519_s19  ;;  %v2277_v43 = vpack.i.bf16 %v2797_v48, %v2811_v54 }
  0xa7   : > { %1075 = vst [vmem:[#allocation1] ss:$2 sm:$0xff] %v2846_v27  ;;  %v2868_v59 = vld.sshfl [vmem:[#allocation1 + $0x20] sm:$0xff pattern:$0x75316420] }
  0xa8   : > { %4110 = vst [vmem:[#allocation34_spill] sm:$0xff] %v2865_v57  ;;  %v2870_v40 = vld.sshfl [vmem:[#allocation1 + $0x28] sm:$0xff pattern:$0x75316420]  ;;  %v2892_v1 = vpop.permute.xlu2 %2177 }
  0xa9   : > { %1216 = vst [vmem:[#allocation1 + $0x10] ss:$2 sm:$0xff] %v2759_v33 }
  0xaa   : > { %1300 = vst [vmem:[#allocation1 + $0x21] ss:$2 sm:$0xff] %v2723_v56 }
  0xab   : > { %v2873_v39 = vld.sshfl [vmem:[#allocation1 + $0x30] sm:$0xff pattern:$0x75316420]  ;;  %v2875_v32 = vld.sshfl [vmem:[#allocation1 + $0x38] sm:$0xff pattern:$0x75316420]  ;;  %611 = vrot.lane.b32.xlu1 %v578_v60, %s2519_s19 }
  0xac   : > { %1218 = vst [vmem:[#allocation1 + $0x30] ss:$2 sm:$0xff] %v2772_v38 }
  0xad   : > { %v2917_v31 = vpop.permute.xlu1 %2162 }
  0xae   : > { %v2879_v26 = vld.sshfl [vmem:[#allocation1] sm:$0xff pattern:$0x75316420]  ;;  %v2881_v50 = vld.sshfl [vmem:[#allocation1 + $0x8] sm:$0xff pattern:$0x75316420]  ;;  %597 = vrot.lane.b32.xlu0 %v2806_v52, %s2519_s19  ;;  %2278 = vrot.lane.b32.xlu2 %v2277_v43, %s2515_s10  ;;  %v2282_v43 = vpack.i.bf16 %v2827_v35, %v2825_v2  ;;  %v4056_v21 = vunpack.i.l.bf16 %v2917_v31 }
  0xaf   : > { %4111 = vst [vmem:[#allocation35_spill] sm:$0xff] %v2879_v26  ;;  %v4053_v26 = vunpack.i.l.bf16 %v2892_v1  ;;  %v2932_v52 = vld [vmem:[%s2602_s9 + $0x104] sm:$0xf]  ;;  %s1889_s9 = sshll.u32 %s1886_s7, 4  ;;  %s1890_s9 = int_to_ptr.hbm [resolvable:$true] %s1889_s9 }
  0xb0   : > { %4112 = vst [vmem:[#allocation36_spill] sm:$0xff] %v2881_v50  ;;  %v2888_v46 = vld.sshfl [vmem:[#allocation1 + $0x10] sm:$0xff pattern:$0x75316420]  ;;  %v2924_v60 = vpop.permute.xlu2 %2197 }
  0xb1   : > { %1105 = vst [vmem:[#allocation1 + $0x1] ss:$2 sm:$0xff] %v2819_v4  ;;  %v2890_v29 = vld.sshfl [vmem:[#allocation1 + $0x18] sm:$0xff pattern:$0x75316420]  ;;  %v2910_v0 = vsel %vm324_vm0, %v4113_v42, %v4053_v26  ;;  %v2922_v42 = vpop.permute.xlu0 %2152  ;;  %v4129_v7 = vunpack.i.l.bf16 %v2924_v60 }
  0xb2   : > { %1298 = vst [vmem:[#allocation1 + $0x11] ss:$2 sm:$0xff] %v2735_v63  ;;  %v1307_v50 = vld.sshfl [vmem:[#allocation1 + $0x20] sm:$0xff pattern:$0x75316420] }
  0xb3   : > { %v2896_v9 = vld.sshfl [vmem:[#allocation1 + $0x28] sm:$0xff pattern:$0x75316420]  ;;  %v2901_v5 = vld.sshfl [vmem:[#allocation1 + $0x30] sm:$0xff pattern:$0x75316420] }
  0xb4   : > { %1313 = vst [vmem:[#allocation1 + $0x21] ss:$2 sm:$0xff] %v2740_v13  ;;  %v2903_v49 = vld.sshfl [vmem:[#allocation1 + $0x38] sm:$0xff pattern:$0x75316420] }
  0xb5   : > { %4114 = vst [vmem:[#allocation37_spill] sm:$0xff] %v2910_v0  ;;  %v2950_v2 = vpop.permute.xlu1 %2167  ;;  %v4118_v0 = vunpack.i.l.bf16 %v2865_v57 }
  0xb6   : > { %1302 = vst [vmem:[#allocation1 + $0x31] ss:$2 sm:$0xff] %v2747_v28  ;;  %2283 = vrot.lane.b32.xlu0 %v2282_v43, %s2515_s10  ;;  %2288 = vrot.lane.b32.xlu2 %v2287_v17, %s2516_s11  ;;  %v4119_v3 = vunpack.i.h.bf16 %v2950_v2 }
  0xb7   : > { %4115 = vst [vmem:[#allocation38_spill] sm:$0xff] %v2917_v31 }
  0xb8   : > { %v1112_v48 = vld.sshfl [vmem:[#allocation1] sm:$0xff pattern:$0x75316420]  ;;  %v1113_v54 = vld.sshfl [vmem:[#allocation1 + $0x8] sm:$0xff pattern:$0x75316420]  ;;  %v2963_v43 = vpop.permute.xlu2 %2212 }
  0xb9   : > { %1120 = vst [vmem:[#allocation1 + $0x1] ss:$2 sm:$0xff] %v2846_v27  ;;  %v1306_v45 = vld.sshfl [vmem:[#allocation1 + $0x18] sm:$0xff pattern:$0x75316420]  ;;  %v2961_v18 = vpop.permute.xlu0 %2157  ;;  %v2317_v17 = vpack.i.bf16 %v1113_v54, %v1112_v48  ;;  %v2978_v48 = vsel %vm324_vm0, %v4119_v3, %v4118_v0  ;;  %v4121_v54 = vunpack.i.h.bf16 %v2917_v31 }
  0xba   : > { %v2920_v41 = vld.sshfl [vmem:[#allocation1 + $0x10] sm:$0xff pattern:$0x75316420]  ;;  %4116 = vst [vmem:[#allocation39_spill] sm:$0xff] %v2922_v42  ;;  %v2312_v26 = vpack.i.bf16 %v1307_v50, %v1306_v45 }
  0xbb   : > { %1312 = vst [vmem:[#allocation1 + $0x11] ss:$2 sm:$0xff] %v2759_v33  ;;  %v2927_v37 = vld.sshfl [vmem:[#allocation1 + $0x20] sm:$0xff pattern:$0x75316420] }
  0xbc   : > { %v2929_v36 = vld.sshfl [vmem:[#allocation1 + $0x28] sm:$0xff pattern:$0x75316420]  ;;  %2313 = vrot.lane.b32.xlu1 %v2312_v26, %s2517_s18  ;;  %v2297_v26 = vpack.i.bf16 %v2875_v32, %v2873_v39  ;;  %v4123_v39 = vunpack.i.h.bf16 %v2961_v18 }
  0xbd   : > { %4117 = vst [vmem:[#allocation40_spill] sm:$0xff] %v2929_v36  ;;  %v2938_v16 = vld.sshfl [vmem:[#allocation1 + $0x30] sm:$0xff pattern:$0x75316420]  ;;  %v2292_v36 = vpack.i.bf16 %v2839_v24, %v2863_v53 }
  0xbe   : > { %1395 = vst [vmem:[#allocation1 + $0x20] ss:$2 sm:$0xff] %v2723_v56  ;;  %v2940_v19 = vld.sshfl [vmem:[#allocation1 + $0x38] sm:$0xff pattern:$0x75316420]  ;;  %v4057_v56 = vunpack.i.h.bf16 %v2922_v42  ;;  %v2997_v3 = vsel %vm324_vm0, %v4123_v39, %v4056_v21  ;;  %2298 = vrot.lane.b32.xlu2 %v2297_v26, %s2516_s11  ;;  %v3014_v39 = vpop.permute.xlu1 %2187 }
  0xbf   : > { %1314 = vst [vmem:[#allocation1 + $0x31] ss:$2 sm:$0xff] %v2772_v38  ;;  %2293 = vrot.lane.b32.xlu0 %v2292_v36, %s2516_s11  ;;  %v2322_v36 = vpack.i.bf16 %v2940_v19, %v2938_v16  ;;  %v2302_v16 = vpack.i.bf16 %v2890_v29, %v2888_v46  ;;  %v2307_v19 = vpack.i.bf16 %v2920_v41, %v2761_v34  ;;  %v4132_v46 = vunpack.i.l.bf16 %v3014_v39 }
  0xc0   : > { %v2944_v45 = vld.sshfl [vmem:[#allocation1] sm:$0xff pattern:$0x75316420]  ;;  %v2946_v50 = vld.sshfl [vmem:[#allocation1 + $0x8] sm:$0xff pattern:$0x75316420] }
  0xc1   : > { %1132 = vst [vmem:[#allocation1 + $0x1] ss:$2 sm:$0xff] %v2932_v52  ;;  %v3019_v6 = vpop.permute.xlu0 %2182 }
  0xc2   : > { %v2955_v35 = vld.sshfl [vmem:[#allocation1 + $0x10] sm:$0xff pattern:$0x75316420]  ;;  %v2957_v51 = vld.sshfl [vmem:[#allocation1 + $0x18] sm:$0xff pattern:$0x75316420]  ;;  %v4061_v32 = vunpack.i.h.bf16 %v3019_v6  ;;  %v4060_v0 = vunpack.i.l.bf16 %v3019_v6 }
  0xc3   : > { %1393 = vst [vmem:[#allocation1 + $0x10] ss:$2 sm:$0xff] %v2735_v63  ;;  %v4120_v63 = vunpack.i.l.bf16 %v2950_v2 }
  0xc4   : > { %2318 = vrot.lane.b32.xlu1 %v2317_v17, %s2515_s10  ;;  %4127 = vst [vmem:[#allocation44_spill] sm:$0xff] %v3019_v6 }
  0xc5   : > { %v2985_v44 = vsel %vm324_vm0, %v4121_v54, %v4120_v63  ;;  %v4125_v54 = vunpack.i.l.bf16 %v2961_v18  ;;  %v1402_v17 = vld.sshfl [vmem:[#allocation1 + $0x20] sm:$0xff pattern:$0x75316420]  ;;  %v1403_v26 = vld.sshfl [vmem:[#allocation1 + $0x28] sm:$0xff pattern:$0x75316420] }
  0xc6   : > { %4122 = vst [vmem:[#allocation41_spill] sm:$0xff] %v2985_v44  ;;  %v2988_v24 = vld.sshfl [vmem:[#allocation1 + $0x30] sm:$0xff pattern:$0x75316420]  ;;  %2308 = vrot.lane.b32.xlu2 %v2307_v19, %s2517_s18 }
  0xc7   : > { %v2990_v53 = vld.sshfl [vmem:[#allocation1 + $0x38] sm:$0xff pattern:$0x75316420]  ;;  %v3010_v57 = vsel %vm324_vm0, %v4057_v56, %v4125_v54  ;;  %v3021_v54 = vpop.permute.xlu2 %2237  ;;  %v4128_v56 = vunpack.i.h.bf16 %v2924_v60  ;;  %1408 = vst [vmem:[#allocation1 + $0x20] ss:$2 sm:$0xff] %v2740_v13  ;;  %2303 = vrot.lane.b32.xlu0 %v2302_v16, %s2516_s11 }
  0xc8   : > { %1397 = vst [vmem:[#allocation1 + $0x30] ss:$2 sm:$0xff] %v2747_v28  ;;  %v3003_v63 = vld.sshfl [vmem:[#allocation1] sm:$0xff pattern:$0x75316420]  ;;  %v4063_v31 = vunpack.i.h.bf16 %v3021_v54  ;;  %v4137_v58 = vunpack.i.h.bf16 %v3021_v54 }
  0xc9   : > { %4124 = vst [vmem:[#allocation42_spill] sm:$0xff] %v3003_v63  ;;  %v425_v44 = vsel %vm420_vm1, %v4129_v7, %v4128_v56  ;;  %v4062_v63 = vunpack.i.l.bf16 %v3021_v54  ;;  %v4130_v7 = vunpack.i.h.bf16 %v2892_v1 }
  0xca   : > { %4126 = vst [vmem:[#allocation43_spill] sm:$0xff] %v3010_v57  ;;  %v1400_v28 = vld.sshfl [vmem:[#allocation1 + $0x10] sm:$0xff pattern:$0x75316420] }
  0xcb   : > { %1200 = vst [vmem:[#allocation1] ss:$2 sm:$0xff] %v2819_v4  ;;  %v1401_v21 = vld.sshfl [vmem:[#allocation1 + $0x18] sm:$0xff pattern:$0x75316420]  ;;  %v3045_v56 = vsel %vm324_vm0, %v4130_v7, %v4060_v0  ;;  %v522_v13 = vsel %vm517_vm2, %v4062_v63, %v4063_v31  ;;  %v3062_v7 = vsel %vm324_vm0, %v4061_v32, %v4132_v46  ;;  %v3066_v0 = vpop.permute.xlu1 %2192 }
  0xcc   : > { %1407 = vst [vmem:[#allocation1 + $0x10] ss:$2 sm:$0xff] %v2759_v33  ;;  %2323 = vrot.lane.b32.xlu1 %v2322_v36, %s2517_s18  ;;  %v3055_v29 = vsel %vm630_vm3, %v425_v44, %v522_v13  ;;  %v2327_v36 = vpack.i.bf16 %v2795_v47, %v2944_v45 }
  0xcd   : > { %4131 = vst [vmem:[#allocation45_spill] sm:$0xff] %v3055_v29 }
  0xce   : > { %4133 = vst [vmem:[#allocation46_spill] sm:$0xff] %v3062_v7  ;;  %1428 = vrot.lane.b32.xlu2 %v1402_v17, %s2519_s19 }
  0xcf   : > { %v1405_v33 = vld.sshfl [vmem:[#allocation1 + $0x38] sm:$0xff pattern:$0x75316420]  ;;  %v1404_v8 = vld.sshfl [vmem:[#allocation1 + $0x30] sm:$0xff pattern:$0x75316420]  ;;  %v3071_v44 = vpop.permute.xlu2 %2247  ;;  %1424 = vrot.lane.b32.xlu0 %v1400_v28, %s2519_s19 }
  0xd0   : > { %1409 = vst [vmem:[#allocation1 + $0x30] ss:$2 sm:$0xff] %v2772_v38  ;;  %v3069_v38 = vpop.permute.xlu0 %2202 }
  0xd2   : > { %v1207_v34 = vld.sshfl [vmem:[#allocation1] sm:$0xff pattern:$0x75316420]  ;;  %v1208_v41 = vld.sshfl [vmem:[#allocation1 + $0x8] sm:$0xff pattern:$0x75316420] }
  0xd3   : > { %1215 = vst [vmem:[#allocation1] ss:$2 sm:$0xff] %v2846_v27  ;;  %v3078_v16 = vpop.permute.xlu1 %2222  ;;  %v1412_v47 = vld.sshfl [vmem:[#allocation1 + $0x10] sm:$0xff pattern:$0x75316420] }
  0xd4   : > { %2328 = vrot.lane.b32.xlu1 %v2327_v36, %s2515_s10  ;;  %v4069_v36 = vunpack.i.l.bf16 %v2963_v43 }
  0xd6   : > { %1434 = vrot.lane.b32.xlu2 %v1405_v33, %s2519_s19 }
  0xd7   : > { %v3081_v19 = vpop.permute.xlu2 %583  ;;  %1440 = vrot.lane.b32.xlu0 %v1412_v47, %s2519_s19 }
  0xd8   : > { %v3083_v32 = vpop.permute.xlu0 %2207 }
  0xda   : > { %v1219_v13 = vld.sshfl [vmem:[#allocation1] sm:$0xff pattern:$0x75316420]  ;;  %v1220_v46 = vld.sshfl [vmem:[#allocation1 + $0x8] sm:$0xff pattern:$0x75316420] }
  0xdb   : > { %1227 = vst [vmem:[#allocation1] ss:$2 sm:$0xff] %v2932_v52  ;;  %v3092_v17 = vpop.permute.xlu1 %2227  ;;  %v2342_v47 = vpack.i.bf16 %v2841_v25, %v1219_v13  ;;  %v4072_v13 = vunpack.i.l.bf16 %v3069_v38 }
  0xdc   : > { %1426 = vrot.lane.b32.xlu1 %v1401_v21, %s2519_s19  ;;  %v4067_v28 = vunpack.i.h.bf16 %v3092_v17  ;;  %v4068_v21 = vunpack.i.l.bf16 %v3078_v16 }
  0xde   : > { %v3109_v33 = vsel %vm420_vm1, %v4067_v28, %v4069_v36  ;;  %1430 = vrot.lane.b32.xlu2 %v1403_v26, %s2519_s19  ;;  %v1413_v36 = vld.sshfl [vmem:[#allocation1 + $0x18] sm:$0xff pattern:$0x75316420] }
  0xdf   : > { %v3097_v31 = vpop.permute.xlu2 %589  ;;  %4135 = vst [vmem:[#allocation48_spill] sm:$0xff] %v3109_v33  ;;  %2343 = vrot.lane.b32.xlu0 %v2342_v47, %s2516_s11  ;;  %v2332_v33 = vpack.i.bf16 %v1208_v41, %v1207_v34  ;;  %v4136_v47 = vunpack.i.h.bf16 %v2924_v60 }
  0xe0   : > { %4134 = vst [vmem:[#allocation47_spill] sm:$0xff] %v3097_v31  ;;  %v3099_v63 = vpop.permute.xlu0 %2217 }
  0xe1   : > { %v2220_v7 = vunpack.i.h.bf16 %v3099_v63  ;;  %v426_v26 = vsel %vm420_vm1, %v4136_v47, %v4072_v13  ;;  %v4076_v34 = vunpack.i.l.bf16 %v3099_v63 }
  0xe2   : > { %v3088_v45 = vld.sshfl [vmem:[#allocation1] sm:$0xff pattern:$0x75316420] }
  0xe3   : > { %1296 = vst [vmem:[#allocation1 + $0x1] ss:$2 sm:$0xff] %v2819_v4  ;;  %v434_v6 = vsel %vm420_vm1, %v2220_v7, %v4068_v21  ;;  %v3119_v25 = vpop.permute.xlu1 %2232  ;;  %v433_v13 = vsel %vm420_vm1, %v4076_v34, %v2220_v7 }
  0xe4   : > { %1432 = vrot.lane.b32.xlu1 %v1404_v8, %s2519_s19 }
  0xe6   : > { %2333 = vrot.lane.b32.xlu2 %v2332_v33, %s2516_s11 }
  0xe7   : > { %v3123_v28 = vpop.permute.xlu2 %601 }
  0xe8   : > { %v3125_v21 = vpop.permute.xlu0 %2242 }
  0xe9   : > { %v4073_v8 = vunpack.i.l.bf16 %v3125_v21 }
  0xea   : > { %v1303_v31 = vld.sshfl [vmem:[#allocation1] sm:$0xff pattern:$0x75316420]  ;;  %v1304_v30 = vld.sshfl [vmem:[#allocation1 + $0x8] sm:$0xff pattern:$0x75316420] }
  0xeb   : > { %1311 = vst [vmem:[#allocation1 + $0x1] ss:$2 sm:$0xff] %v2846_v27  ;;  %v2362_v29 = vpack.i.bf16 %v1304_v30, %v1303_v31  ;;  %v523_v10 = vsel %vm517_vm2, %v4137_v58, %v4073_v8  ;;  %v3146_v31 = vpop.permute.xlu1 %2257 }
  0xec   : > { %1442 = vrot.lane.b32.xlu1 %v1413_v36, %s2519_s19  ;;  %v3140_v57 = vsel %vm630_vm3, %v426_v26, %v523_v10  ;;  %v4074_v58 = vunpack.i.l.bf16 %v3146_v31  ;;  %v2347_v10 = vpack.i.bf16 %v1220_v46, %v2868_v59  ;;  %v1414_v26 = vld.sshfl [vmem:[#allocation1 + $0x20] sm:$0xff pattern:$0x75316420] }
  0xed   : > { %4138 = vst [vmem:[#allocation49_spill] sm:$0xff] %v3140_v57  ;;  %2363 = vrot.lane.b32.xlu0 %v2362_v29, %s2517_s18 }
  0xee   : > { %1444 = vrot.lane.b32.xlu2 %v1414_v26, %s2519_s19 }
  0xef   : > { %v3151_v41 = vpop.permute.xlu2 %607 }
  0xf0   : > { %v3153_v36 = vpop.permute.xlu0 %2252 }
  0xf1   : > { %v2255_v47 = vunpack.i.h.bf16 %v3153_v36  ;;  %v4077_v29 = vunpack.i.l.bf16 %v3153_v36 }
  0xf2   : > { %v1316_v42 = vld.sshfl [vmem:[#allocation1 + $0x8] sm:$0xff pattern:$0x75316420]  ;;  %v3142_v30 = vld.sshfl [vmem:[#allocation1] sm:$0xff pattern:$0x75316420] }
  0xf3   : > { %1323 = vst [vmem:[#allocation1 + $0x1] ss:$2 sm:$0xff] %v2932_v52  ;;  %v2372_v33 = vpack.i.bf16 %v1316_v42, %v2927_v37  ;;  %v530_v8 = vsel %vm517_vm2, %v4077_v29, %v2255_v47  ;;  %v531_v57 = vsel %vm517_vm2, %v2255_v47, %v4074_v58  ;;  %v3181_v46 = vpop.permute.xlu1 %587  ;;  %v4078_v58 = vunpack.i.l.bf16 %v3066_v0  ;;  %v1416_v29 = vld.sshfl [vmem:[#allocation1 + $0x30] sm:$0xff pattern:$0x75316420] }
  0xf4   : > { %2348 = vrot.lane.b32.xlu1 %v2347_v10, %s2516_s11  ;;  %v3172_v37 = vsel %vm630_vm3, %v433_v13, %v530_v8  ;;  %v3175_v42 = vsel %vm630_vm3, %v434_v6, %v531_v57  ;;  %v2337_v13 = vpack.i.bf16 %v2957_v51, %v2955_v35  ;;  %v2235_v6 = vunpack.i.h.bf16 %v3119_v25 }
  0xf5   : > { %2373 = vrot.lane.b32.xlu0 %v2372_v33, %s2517_s18  ;;  %v4075_v57 = vunpack.i.l.bf16 %v3119_v25  ;;  %v4139_v8 = vpack.i.bf16 %v2836_v62, %v2834_v61  ;;  %v4140_v62 = vunpack.i.l.bf16 %v3021_v54 }
  0xf6   : > { %2338 = vrot.lane.b32.xlu2 %v2337_v13, %s2517_s18 }
  0xf7   : > { %v3186_v47 = vpop.permute.xlu2 %665  ;;  %v520_v61 = vsel %vm517_vm2, %v4075_v57, %v2235_v6  ;;  %v4141_v57 = vunpack.i.l.bf16 %v2924_v60  ;;  %v3236_v60 = vld [vmem:[%s4050_s1] sm:$0xff] }
  0xf8   : > { %v3184_v10 = vpop.permute.xlu0 %2262 }
  0xfa   : > { %v3177_v7 = vld.sshfl [vmem:[#allocation1] sm:$0xff pattern:$0x75316420] }
  0xfb   : > { %1391 = vst [vmem:[#allocation1] ss:$2 sm:$0xff] %v2819_v4  ;;  %v2195_v4 = vunpack.i.h.bf16 %v3066_v0  ;;  %v594_v35 = vpop.permute.xlu1 %593 }
  0xfc   : > { %2353 = vrot.lane.b32.xlu1 %v4139_v8, %s2515_s10  ;;  %v521_v8 = vsel %vm517_vm2, %v2235_v6, %v4140_v62  ;;  %v4142_v6 = vunpack.i.h.bf16 %v2961_v18  ;;  %v4143_v62 = vunpack.i.l.bf16 %v2961_v18  ;;  %v2229_v18 = vunpack.i.l.bf16 %v3092_v17 }
  0xfd   : > { %v424_v54 = vsel %vm420_vm1, %v2195_v4, %v4141_v57 }
  0xfe   : > { %v327_v34 = vsel %vm324_vm0, %v4143_v62, %v4142_v6 }
  0xff   : > { %v3203_v59 = vpop.permute.xlu2 %2273  ;;  %v633_v57 = vsel %vm630_vm3, %v2647_v14, %v327_v34  ;;  %v4144_v14 = vpack.i.bf16 %v2990_v53, %v2988_v24 }
 0x100   : > { %v586_v51 = vpop.permute.xlu0 %585 }
 0x101   : > { %v617_v13 = vsel %vm613_vm4, %v586_v51, %v3181_v46 }
 0x102   : > { %v1398_v33 = vld.sshfl [vmem:[#allocation1] sm:$0xff pattern:$0x75316420]  ;;  %v3196_v26 = vld.sshfl [vmem:[#allocation1 + $0x8] sm:$0xff pattern:$0x75316420]  ;;  %1985 = vmatpush.msk.msra.mxu3 %vm630_vm3, %v617_v13  ;;  %v2357_v13 = vpack.i.bf16 %v2946_v50, %v2814_v55 }
 0x103   : > { %1420 = vrot.lane.b32.xlu0 %v1398_v33, %s2519_s19  ;;  %1406 = vst [vmem:[#allocation1] ss:$2 sm:$0xff] %v2846_v27  ;;  %v616_v33 = vsel %vm613_vm4, %v3081_v19, %v586_v51  ;;  %v423_v27 = vsel %vm420_vm1, %v4078_v58, %v2195_v4  ;;  %v2245_v58 = vunpack.i.h.bf16 %v3125_v21  ;;  %v634_v4 = vsel %vm630_vm3, %v2649_v15, %v2997_v3 }
 0x104   : > { %1983 = vmatpush.msk.msra.mxu2 %vm630_vm3, %v616_v33  ;;  %v649_v51 = vsel %vm630_vm3, %v423_v27, %v520_v61  ;;  %v650_v33 = vsel %vm630_vm3, %v424_v54, %v521_v8  ;;  %1448 = vrot.lane.b32.xlu1 %v1416_v29, %s2519_s19  ;;  %v2205_v61 = vunpack.i.h.bf16 %v3069_v38  ;;  %v3248_v8 = vpop.permute.xlu1 %2267 }
 0x105   : > { %778 = vmatpush.msra.mxu3 %v650_v33  ;;  %2358 = vrot.lane.b32.xlu2 %v2357_v13, %s2515_s10  ;;  %v2269_v15 = vunpack.i.l.bf16 %v3248_v8  ;;  %v2215_v13 = vunpack.i.h.bf16 %v2963_v43 }
 0x106   : > { %758 = vmatpush.msra.mxu2 %v649_v51  ;;  %v428_v27 = vsel %vm420_vm1, %v2205_v61, %v2229_v18  ;;  %v4148_v51 = vunpack.i.l.bf16 %v2950_v2 }
 0x107   : > { %779 = vmatpush.msra.mxu3 %v634_v4  ;;  %v3263_v34 = vpop.permute.xlu2 %595  ;;  %v525_v54 = vsel %vm517_vm2, %v2245_v58, %v2269_v15 }
 0x108   : > { %759 = vmatpush.msra.mxu2 %v633_v57  ;;  %1986 = vmatmul.msk.f32.vlgmr.msra.gmra.mxu3 %vm668_vm5, %v3236_v60  ;;  %v3261_v3 = vpop.permute.xlu0 %591  ;;  %v621_v53 = vsel %vm613_vm4, %v594_v35, %v3263_v34  ;;  %v654_v62 = vsel %vm630_vm3, %v428_v27, %v525_v54  ;;  %v2249_v57 = vunpack.i.l.bf16 %v3071_v44  ;;  %v4152_v27 = vunpack.i.l.bf16 %v2892_v1 }
 0x109   : > { %1984 = vmatmul.msk.f32.vlgmr.msra.gmra.mxu2 %vm668_vm5, %v3236_v60  ;;  %v620_v24 = vsel %vm613_vm4, %v3261_v3, %v594_v35  ;;  %1993 = vmatpush.msk.msrb.mxu3 %vm630_vm3, %v621_v53  ;;  %v4147_v35 = vunpack.i.h.bf16 %v2950_v2  ;;  %v638_v2 = vsel %vm630_vm3, %v2641_v12, %v2978_v48  ;;  %v4151_v53 = vunpack.i.h.bf16 %v2892_v1 }
 0x10a   : > { %v1410_v55 = vld.sshfl [vmem:[#allocation1] sm:$0xff pattern:$0x75316420]  ;;  %v3245_v50 = vld.sshfl [vmem:[#allocation1 + $0x8] sm:$0xff pattern:$0x75316420]  ;;  %1991 = vmatpush.msk.msrb.mxu2 %vm630_vm3, %v620_v24 }
 0x10b   : > { %1418 = vst [vmem:[#allocation1] ss:$2 sm:$0xff] %v2932_v52  ;;  %2388 = vrot.lane.b32.xlu0 %v4144_v14, %s2517_s18  ;;  %v4145_v52 = vunpack.i.l.bf16 %v3125_v21  ;;  %v4146_v21 = vunpack.i.l.bf16 %v3069_v38  ;;  %v331_v33 = vsel %vm324_vm0, %v4148_v51, %v4147_v35  ;;  %858 = vmatpush.msrb.mxu3 %v654_v62  ;;  %v1417_v38 = vld.sshfl [vmem:[#allocation1 + $0x38] sm:$0xff pattern:$0x75316420]  ;;  %v335_v54 = vsel %vm324_vm0, %v4152_v27, %v4151_v53 }
 0x10c   : > { %1422 = vrot.lane.b32.xlu1 %v3196_v26, %s2519_s19  ;;  %v3300_v14 = vpop.permute.xlu1 %599  ;;  %v2260_v35 = vunpack.i.h.bf16 %v3146_v31  ;;  %v641_v1 = vsel %vm630_vm3, %v2667_v22, %v335_v54  ;;  %v4154_v51 = vpack.i.bf16 %v2903_v49, %v2901_v5 }
 0x10d   : > { %v524_v29 = vsel %vm517_vm2, %v4145_v52, %v2245_v58  ;;  %v427_v6 = vsel %vm420_vm1, %v4146_v21, %v2205_v61  ;;  %v2250_v58 = vunpack.i.h.bf16 %v3071_v44  ;;  %v637_v61 = vsel %vm630_vm3, %v2638_v11, %v331_v33  ;;  %859 = vmatpush.msrb.mxu3 %v638_v2  ;;  %1450 = vrot.lane.b32.xlu2 %v1417_v38, %s2519_s19 }
 0x10e   : > { %v653_v4 = vsel %vm630_vm3, %v427_v6, %v524_v29  ;;  %v624_v52 = vsel %vm613_vm4, %v3300_v14, %v3123_v28  ;;  %v4149_v11 = vunpack.i.l.bf16 %v2963_v43  ;;  %v4150_v29 = vunpack.i.l.bf16 %v3153_v36 }
 0x10f   : > { %838 = vmatpush.msrb.mxu2 %v653_v4  ;;  %v528_v12 = vsel %vm517_vm2, %v2249_v57, %v2250_v58  ;;  %v4153_v36 = vunpack.i.l.bf16 %v3099_v63  ;;  %v642_v63 = vsel %vm630_vm3, %v2669_v23, %v3045_v56  ;;  %v2190_v33 = vunpack.i.h.bf16 %v3014_v39 }
 0x110   : > { %v431_v26 = vsel %vm420_vm1, %v4149_v11, %v2215_v13  ;;  %v3315_v48 = vpop.permute.xlu0 %603  ;;  %1994 = vmatmul.msk.f32.vlgmr.msrb.gmra.mxu3 %vm668_vm5, %v3236_v60  ;;  %v529_v43 = vsel %vm517_vm2, %v2250_v58, %v4150_v29  ;;  %v4155_v23 = vunpack.i.l.bf16 %v3146_v31  ;;  %v4157_v4 = vunpack.i.l.bf16 %v3014_v39  ;;  %v4158_v29 = vld [vmem:[#allocation39_spill] sm:$0xff]  ;;  %v4182_v39 = vld [vmem:[#allocation29_spill] sm:$0xff] }
 0x111   : > { %839 = vmatpush.msrb.mxu2 %v637_v61  ;;  %v625_v24 = vsel %vm613_vm4, %v3123_v28, %v3315_v48  ;;  %v657_v21 = vsel %vm630_vm3, %v431_v26, %v528_v12  ;;  %v432_v6 = vsel %vm420_vm1, %v2215_v13, %v4153_v36  ;;  %v2367_v28 = vpack.i.bf16 %v2896_v9, %v3142_v30 }
 0x112   : > { %1992 = vmatmul.msk.f32.vlgmr.msrb.gmra.mxu2 %vm668_vm5, %v3236_v60  ;;  %2001 = vmatpush.msk.msra.mxu3 %vm630_vm3, %v625_v24  ;;  %v658_v62 = vsel %vm630_vm3, %v432_v6, %v529_v43  ;;  %v2225_v9 = vunpack.i.h.bf16 %v3078_v16  ;;  %v532_v5 = vsel %vm517_vm2, %v4155_v23, %v2260_v35  ;;  %v4156_v13 = vunpack.i.l.bf16 %v3078_v16  ;;  %v1419_v26 = vld.sshfl [vmem:[#allocation1] sm:$0xff pattern:$0x75316420]  ;;  %v4165_v23 = vld [vmem:[#allocation31_spill] sm:$0xff]  ;;  %v4177_v16 = vld [vmem:[#allocation48_spill] sm:$0xff] }
 0x113   : > { %1436 = vrot.lane.b32.xlu0 %v1410_v55, %s2519_s19  ;;  %v3317_v55 = vpop.permute.xlu2 %2278  ;;  %1999 = vmatpush.msk.msra.mxu2 %vm630_vm3, %v624_v52  ;;  %v339_v38 = vsel %vm324_vm0, %v4157_v4, %v2190_v33  ;;  %v2382_v2 = vpack.i.bf16 %v2870_v40, %v3088_v45  ;;  %v2210_v52 = vunpack.i.h.bf16 %v3083_v32  ;;  %v2264_v11 = vunpack.i.l.bf16 %v3184_v10 }
 0x114   : > { %938 = vmatpush.msra.mxu3 %v658_v62  ;;  %2378 = vrot.lane.b32.xlu1 %v4154_v51, %s2516_s11  ;;  %v3353_v30 = vpop.permute.xlu1 %605  ;;  %v435_v58 = vsel %vm420_vm1, %v4156_v13, %v2225_v9  ;;  %v645_v12 = vsel %vm630_vm3, %v2662_v20, %v339_v38  ;;  %v2154_v43 = vunpack.i.l.bf16 %v4158_v29  ;;  %v2209_v24 = vunpack.i.l.bf16 %v3083_v32  ;;  %v1415_v62 = vld.sshfl [vmem:[#allocation1 + $0x28] sm:$0xff pattern:$0x75316420] }
 0x115   : > { %918 = vmatpush.msra.mxu2 %v657_v21  ;;  %2368 = vrot.lane.b32.xlu2 %v2367_v28, %s2517_s18  ;;  %v661_v61 = vsel %vm630_vm3, %v435_v58, %v532_v5  ;;  %v4159_v40 = vunpack.i.l.bf16 %v3119_v25  ;;  %v4160_v25 = vunpack.i.l.bf16 %v3066_v0  ;;  %v4161_v36 = vunpack.i.h.bf16 %v4158_v29  ;;  %v4163_v0 = vld [vmem:[#allocation11_spill] sm:$0xff] }
 0x116   : > { %939 = vmatpush.msra.mxu3 %v642_v63  ;;  %v4164_v63 = vld [vmem:[#allocation30_spill] sm:$0xff]  ;;  %v4167_v13 = vld [vmem:[#allocation47_spill] sm:$0xff]  ;;  %v2270_v4 = vunpack.i.h.bf16 %v3248_v8  ;;  %v2275_v29 = vunpack.i.l.bf16 %v3203_v59 }
 0x117   : > { %919 = vmatpush.msra.mxu2 %v641_v1  ;;  %v422_v27 = vsel %vm420_vm1, %v2210_v52, %v4160_v25  ;;  %v325_v6 = vsel %vm324_vm0, %v2154_v43, %v4161_v36  ;;  %v4162_v1 = vld [vmem:[#allocation43_spill] sm:$0xff]  ;;  %v2392_v5 = vpack.i.bf16 %v4165_v23, %v4164_v63  ;;  %v619_v58 = vsel %vm613_vm4, %v4167_v13, %v3261_v3  ;;  %v4175_v25 = vld [vmem:[#allocation45_spill] sm:$0xff] }
 0x118   : > { %v610_v22 = vpop.permute.xlu0 %609  ;;  %2002 = vmatmul.msk.f32.vlgmr.msra.gmra.mxu3 %vm668_vm5, %v3236_v60  ;;  %v632_v51 = vsel %vm630_vm3, %v4163_v0, %v4162_v1  ;;  %v618_v3 = vsel %vm613_vm4, %v3181_v46, %v4167_v13  ;;  %v4173_v46 = vld [vmem:[#allocation41_spill] sm:$0xff]  ;;  %v526_v44 = vsel %vm517_vm2, %v2269_v15, %v2270_v4  ;;  %v340_v31 = vsel %vm324_vm0, %v2190_v33, %v2275_v29  ;;  %v4183_v33 = vld [vmem:[#allocation40_spill] sm:$0xff] }
 0x119   : > { %v628_v56 = vsel %vm613_vm4, %v3151_v41, %v610_v22  ;;  %v4186_v23 = vld [vmem:[#allocation37_spill] sm:$0xff]  ;;  %v627_v13 = vsel %vm613_vm4, %v3353_v30, %v3151_v41 }
 0x11a   : > { %2000 = vmatmul.msk.f32.vlgmr.msra.gmra.mxu2 %vm668_vm5, %v3236_v60 }
 0x11b   : > { %1438 = vrot.lane.b32.xlu0 %v3245_v50, %s2519_s19  ;;  %v3360_v49 = vpop.permute.xlu2 %2288  ;;  %v2265_v50 = vunpack.i.h.bf16 %v3184_v10  ;;  %2007 = vmatpush.msk.msrb.mxu2 %vm630_vm3, %v628_v56  ;;  %v4166_v56 = vld [vmem:[#allocation10_spill] sm:$0xff] }
 0x11c   : > { %1357 = vrot.lane.b32.xlu1 %v3177_v7, %s2517_s18  ;;  %v582_v53 = vpop.permute.xlu1 %581 }
 0x11d   : > { %998 = vmatpush.msrb.mxu2 %v661_v61  ;;  %v519_v45 = vsel %vm517_vm2, %v2265_v50, %v4159_v40  ;;  %2383 = vrot.lane.b32.xlu2 %v2382_v2, %s2516_s11  ;;  %v615_v7 = vsel %vm613_vm4, %v582_v53, %v3081_v19  ;;  %v518_v32 = vsel %vm517_vm2, %v2264_v11, %v2265_v50  ;;  %v2290_v61 = vunpack.i.l.bf16 %v3360_v49  ;;  %v4168_v2 = vld [vmem:[#allocation42_spill] sm:$0xff] }
 0x11e   : > { %1981 = vmatpush.msk.msra.mxu1 %vm630_vm3, %v615_v7  ;;  %v648_v21 = vsel %vm630_vm3, %v422_v27, %v519_v45  ;;  %v421_v19 = vsel %vm420_vm1, %v2209_v24, %v2210_v52  ;;  %v631_v50 = vsel %vm630_vm3, %v4166_v56, %v325_v6  ;;  %v4174_v45 = vld [vmem:[#allocation9_spill] sm:$0xff] }
 0x11f   : > { %999 = vmatpush.msrb.mxu2 %v645_v12  ;;  %v647_v28 = vsel %vm630_vm3, %v421_v19, %v518_v32  ;;  %v4169_v12 = vld [vmem:[#allocation49_spill] sm:$0xff]  ;;  %v636_v7 = vsel %vm630_vm3, %v4174_v45, %v4173_v46  ;;  %v527_v32 = vsel %vm517_vm2, %v2270_v4, %v2249_v57  ;;  %v436_v27 = vsel %vm420_vm1, %v2225_v9, %v2290_v61 }
 0x120   : > { %v580_v20 = vpop.permute.xlu0 %579  ;;  %738 = vmatpush.msra.mxu1 %v648_v21  ;;  %v4176_v21 = vld [vmem:[#allocation8_spill] sm:$0xff]  ;;  %v656_v9 = vsel %vm630_vm3, %v4177_v16, %v527_v32  ;;  %v2280_v32 = vunpack.i.l.bf16 %v3317_v55 }
 0x121   : > { %v614_v54 = vsel %vm613_vm4, %v580_v20, %v582_v53 }
 0x122   : > { %2008 = vmatmul.msk.f32.vlgmr.msrb.gmra.mxu2 %vm668_vm5, %v3236_v60  ;;  %1979 = vmatpush.msk.msra.mxu0 %vm630_vm3, %v614_v54 }
 0x123   : > { %1452 = vrot.lane.b32.xlu0 %v1419_v26, %s2519_s19  ;;  %v3403_v10 = vpop.permute.xlu2 %2298  ;;  %739 = vmatpush.msra.mxu1 %v632_v51  ;;  %v4185_v51 = vld [vmem:[#allocation14_spill] sm:$0xff] }
 0x124   : > { %718 = vmatpush.msra.mxu0 %v647_v28  ;;  %1446 = vrot.lane.b32.xlu1 %v1415_v62, %s2519_s19  ;;  %v612_v38 = vpop.permute.xlu1 %611 }
 0x125   : > { %1982 = vmatmul.msk.f32.vlgmr.msra.gmra.mxu1 %vm668_vm5, %v3236_v60  ;;  %2393 = vrot.lane.b32.xlu2 %v2392_v5, %s2515_s10  ;;  %v629_v52 = vsel %vm613_vm4, %v610_v22, %v612_v38  ;;  %v4170_v22 = vld [vmem:[#allocation38_spill] sm:$0xff]  ;;  %v4187_v5 = vld [vmem:[#allocation15_spill] sm:$0xff] }
 0x126   : > { %719 = vmatpush.msra.mxu0 %v631_v50  ;;  %1989 = vmatpush.msk.msrb.mxu1 %vm630_vm3, %v619_v58  ;;  %v4171_v24 = vunpack.i.h.bf16 %v4170_v22  ;;  %v4172_v53 = vunpack.i.l.bf16 %v4170_v22  ;;  %v640_v56 = vsel %vm630_vm3, %v4187_v5, %v4186_v23  ;;  %v626_v50 = vsel %vm613_vm4, %v3315_v48, %v3353_v30  ;;  %v4188_v58 = vld [vmem:[#allocation44_spill] sm:$0xff] }
 0x127   : > { %1980 = vmatmul.msk.f32.vlgmr.msra.gmra.mxu0 %vm668_vm5, %v3236_v60  ;;  %2009 = vmatpush.msk.msrb.mxu3 %vm630_vm3, %v629_v52  ;;  %v4189_v4 = vunpack.i.h.bf16 %v4188_v58  ;;  %v4190_v38 = vunpack.i.l.bf16 %v4188_v58  ;;  %v4191_v48 = vld [vmem:[#allocation12_spill] sm:$0xff]  ;;  %v4192_v52 = vld [vmem:[#allocation46_spill] sm:$0xff] }
 0x128   : > { %v598_v11 = vpop.permute.xlu0 %597  ;;  %818 = vmatpush.msrb.mxu1 %v4169_v12  ;;  %1987 = vmatpush.msk.msrb.mxu0 %vm630_vm3, %v618_v3  ;;  %v329_v40 = vsel %vm324_vm0, %v4172_v53, %v4171_v24  ;;  %v4193_v3 = vld [vmem:[#allocation13_spill] sm:$0xff] }
 0x129   : > { %v623_v20 = vsel %vm613_vm4, %v598_v11, %v3300_v14  ;;  %v635_v14 = vsel %vm630_vm3, %v4176_v21, %v329_v40  ;;  %v622_v57 = vsel %vm613_vm4, %v3263_v34, %v598_v11  ;;  %v4179_v34 = vld [vmem:[#allocation34_spill] sm:$0xff]  ;;  %v337_v61 = vsel %vm324_vm0, %v4190_v38, %v4189_v4 }
 0x12a   : > { %819 = vmatpush.msrb.mxu1 %v636_v7  ;;  %798 = vmatpush.msrb.mxu0 %v4175_v25  ;;  %v4180_v36 = vunpack.i.h.bf16 %v4179_v34  ;;  %v4181_v6 = vunpack.i.l.bf16 %v4179_v34  ;;  %v643_v41 = vsel %vm630_vm3, %v4191_v48, %v337_v61  ;;  %v644_v11 = vsel %vm630_vm3, %v4193_v3, %v4192_v52  ;;  %v4196_v52 = vld [vmem:[#allocation23_spill] sm:$0xff] }
 0x12b   : > { %1166 = vrot.lane.b32.xlu0 %v4168_v2, %s2515_s10  ;;  %v3443_v26 = vpop.permute.xlu2 %2308  ;;  %v2276_v2 = vunpack.i.h.bf16 %v3203_v59  ;;  %v2291_v25 = vunpack.i.h.bf16 %v3360_v49 }
 0x12c   : > { %v2310_v43 = vunpack.i.l.bf16 %v3443_v26  ;;  %1997 = vmatpush.msk.msra.mxu1 %vm630_vm3, %v623_v20  ;;  %799 = vmatpush.msrb.mxu0 %v635_v14  ;;  %v333_v62 = vsel %vm324_vm0, %v4181_v6, %v4180_v36  ;;  %v2281_v20 = vunpack.i.h.bf16 %v3317_v55 }
 0x12d   : > { %1351 = vrot.lane.b32.xlu2 %v4183_v33, %s2517_s18  ;;  %1990 = vmatmul.msk.f32.vlgmr.msrb.gmra.mxu1 %vm668_vm5, %v3236_v60  ;;  %v639_v63 = vsel %vm630_vm3, %v4185_v51, %v333_v62  ;;  %v2301_v51 = vunpack.i.h.bf16 %v3403_v10 }
 0x12e   : > { %v533_v54 = vsel %vm517_vm2, %v2260_v35, %v2310_v43  ;;  %1995 = vmatpush.msk.msra.mxu0 %vm630_vm3, %v622_v57  ;;  %v4178_v35 = vunpack.i.h.bf16 %v3092_v17  ;;  %898 = vmatpush.msra.mxu1 %v656_v9  ;;  %v3490_v15 = vpop.permute.xlu1 %2313  ;;  %v4184_v17 = vld [vmem:[#allocation16_spill] sm:$0xff]  ;;  %v1170_v9 = vsel %vm324_vm0, %v2276_v2, %v2280_v32  ;;  %v1171_v36 = vsel %vm324_vm0, %v2280_v32, %v2281_v20 }
 0x12f   : > { %v662_v19 = vsel %vm630_vm3, %v436_v27, %v533_v54  ;;  %1988 = vmatmul.msk.f32.vlgmr.msrb.gmra.mxu0 %vm668_vm5, %v3236_v60  ;;  %v2311_v27 = vunpack.i.h.bf16 %v3443_v26  ;;  %v2316_v54 = vunpack.i.h.bf16 %v3490_v15  ;;  %v2315_v21 = vunpack.i.l.bf16 %v3490_v15 }
 0x130   : > { %1018 = vmatpush.msrb.mxu3 %v662_v19  ;;  %v429_v8 = vsel %vm420_vm1, %v2229_v18, %v4178_v35  ;;  %v646_v18 = vsel %vm630_vm3, %v4184_v17, %v340_v31  ;;  %v3506_v1 = vpop.permute.xlu0 %2283  ;;  %899 = vmatpush.msra.mxu1 %v640_v56 }
 0x131   : > { %v655_v28 = vsel %vm630_vm3, %v429_v8, %v526_v44  ;;  %v1361_v8 = vsel %vm517_vm2, %v2311_v27, %v2315_v21  ;;  %v1362_v34 = vsel %vm517_vm2, %v2315_v21, %v2316_v54  ;;  %v2286_v23 = vunpack.i.h.bf16 %v3506_v1 }
 0x132   : > { %878 = vmatpush.msra.mxu0 %v655_v28  ;;  %1019 = vmatpush.msrb.mxu3 %v646_v18  ;;  %v4194_v28 = vld [vmem:[#allocation19_spill] sm:$0xff]  ;;  %v4195_v18 = vld [vmem:[#allocation20_spill] sm:$0xff]  ;;  %v2285_v5 = vunpack.i.l.bf16 %v3506_v1 }
 0x133   : > { %1160 = vrot.lane.b32.xlu0 %v4182_v39, %s2515_s10  ;;  %v1429_v0 = vpop.permute.xlu2 %1428  ;;  %2010 = vmatmul.msk.f32.vlgmr.msrb.gmra.mxu3 %vm668_vm5, %v3236_v60  ;;  %v1472_v17 = vsel %vm630_vm3, %v4194_v28, %v1170_v9  ;;  %s2442_s10 = sshra.s32 %s1890_s9, 4  ;;  %s2443_s10 = int_to_ptr.hbm [resolvable:$true] %s2442_s10 }
 0x134   : > { %879 = vmatpush.msra.mxu0 %v639_v63  ;;  %2005 = vmatpush.msk.msrb.mxu1 %vm630_vm3, %v627_v13  ;;  %v2300_v63 = vunpack.i.l.bf16 %v3403_v10  ;;  %v1174_v61 = vsel %vm324_vm0, %v2285_v5, %v2286_v23  ;;  %s2444_s11 = scalar_lea.hbm %s2443_s10, 256  ;;  %p2449_p3 = scmp.lt.s32.totalorder %s2443_s10, %s4052_s3 }
 0x135   : > { %1998 = vmatmul.msk.f32.vlgmr.msra.gmra.mxu1 %vm668_vm5, %v3236_v60  ;;  %v1476_v3 = vsel %vm630_vm3, %v4196_v52, %v1174_v61  ;;  %p2445_p0 = scmp.ne.s32.totalorder %s2443_s10, %s2444_s11  ;;  %p2450_p5 = scmp.lt.s32.totalorder %s2448_s21, %s2444_s11 }
 0x136   : > { %2003 = vmatpush.msk.msrb.mxu0 %vm630_vm3, %v626_v50  ;;  %978 = vmatpush.msrb.mxu1 %v3175_v42  ;;  %v3534_v30 = vpop.permute.xlu1 %2318  ;;  %v1269_v38 = vsel %vm420_vm1, %v2300_v63, %v2301_v51 }
 0x137   : > { %v2321_v12 = vunpack.i.h.bf16 %v3534_v30  ;;  %1996 = vmatmul.msk.f32.vlgmr.msra.gmra.mxu0 %vm668_vm5, %v3236_v60  ;;  %p2446_p1 = pnand %p2445_p0, %p2583_p4  ;;  %p2451_p6 = por %p2450_p5, %p2449_p3 }
 0x138   : > { %958 = vmatpush.msrb.mxu0 %v3172_v37  ;;  %979 = vmatpush.msrb.mxu1 %v644_v11  ;;  %v3541_v29 = vpop.permute.xlu0 %2293 }
 0x139   : > { %v3552_v59 = vsel %vm324_vm0, %v2321_v12, %v2276_v2  ;;  %v2296_v45 = vunpack.i.h.bf16 %v3541_v29  ;;  %v2295_v7 = vunpack.i.l.bf16 %v3541_v29  ;;  %p2447_p2 = pneg %p2446_p1 }
 0x13a   : > { %959 = vmatpush.msrb.mxu0 %v643_v41 }
 0x13b   : > { %v3543_v37 = vpop.permute.xlu2 %1434  ;;  %v1265_v19 = vsel %vm420_vm1, %v2291_v25, %v2295_v7  ;;  %v1266_v44 = vsel %vm420_vm1, %v2295_v7, %v2296_v45  ;;  %p2452_p7 = pnand %p2451_p6, %p2447_p2 }
 0x13c   : > { %v1488_v6 = vsel %vm630_vm3, %v1265_v19, %v1361_v8  ;;  %v1489_v62 = vsel %vm630_vm3, %v1266_v44, %v1362_v34 }
 0x13d   : > { %2006 = vmatmul.msk.f32.vlgmr.msrb.gmra.mxu1 %vm668_vm5, %v3236_v60 }
 0x13e   : > { %v3554_v42 = vpop.permute.xlu1 %2323 }
 0x13f   : > { %2004 = vmatmul.msk.f32.vlgmr.msrb.gmra.mxu0 %vm668_vm5, %v3236_v60  ;;  %v2326_v39 = vunpack.i.h.bf16 %v3554_v42  ;;  %v2325_v33 = vunpack.i.l.bf16 %v3554_v42 }
 0x140   : > { %v3556_v43 = vpop.permute.xlu0 %2303 }
 0x141   : > { %v1365_v50 = vsel %vm517_vm2, %v2325_v33, %v2326_v39  ;;  %v2306_v11 = vunpack.i.h.bf16 %v3556_v43  ;;  %v2305_v7 = vunpack.i.l.bf16 %v3556_v43 }
 0x142   : > { %v1492_v48 = vsel %vm630_vm3, %v1269_v38, %v1365_v50 }
 0x143   : > { %v3558_v22 = vpop.permute.xlu2 %1430  ;;  %v1273_v44 = vsel %vm420_vm1, %v2305_v7, %v2306_v11 }
 0x144   : > { %v3566_v24 = vsel %vm613_vm4, %v1429_v0, %v3558_v22 }
 0x146   : > { %v3568_v53 = vpop.permute.xlu1 %2328 }
 0x147   : > { %v2331_v52 = vunpack.i.h.bf16 %v3568_v53 }
 0x148   : > { %v3570_v40 = vpop.permute.xlu0 %1424 }
 0x14b   : > { %v3572_v46 = vpop.permute.xlu2 %2333 }
 0x14e   : > { %v1427_v14 = vpop.permute.xlu1 %1426 }
 0x14f   : > { %v1456_v57 = vsel %vm613_vm4, %v3570_v40, %v1427_v14  ;;  %v1457_v16 = vsel %vm613_vm4, %v1427_v14, %v1429_v0  ;;  %v1473_v0 = vsel %vm630_vm3, %v4195_v18, %v1171_v36  ;;  %v4197_v18 = vld [vmem:[#allocation25_spill] sm:$0xff] }
 0x150   : > { %v3592_v31 = vpop.permute.xlu0 %1440  ;;  %2025 = vmatpush.msk.msra.mxu2 %vm630_vm3, %v1456_v57  ;;  %2027 = vmatpush.msk.msra.mxu3 %vm630_vm3, %v1457_v16 }
 0x152   : > { %1588 = vmatpush.msra.mxu2 %v1488_v6  ;;  %1608 = vmatpush.msra.mxu3 %v1489_v62 }
 0x153   : > { %v3594_v35 = vpop.permute.xlu2 %1444 }
 0x154   : > { %1589 = vmatpush.msra.mxu2 %v1472_v17  ;;  %1609 = vmatpush.msra.mxu3 %v1473_v0 }
 0x155   : > { %2026 = vmatmul.msk.f32.vlgmr.msra.gmra.mxu2 %vm668_vm5, %v3236_v60  ;;  %2028 = vmatmul.msk.f32.vlgmr.msra.gmra.mxu3 %vm668_vm5, %v3236_v60 }
 0x156   : > { %v3623_v56 = vpop.permute.xlu1 %1432 }
 0x157   : > { %v1460_v13 = vsel %vm613_vm4, %v3623_v56, %v3543_v37 }
 0x158   : > { %v3633_v58 = vpop.permute.xlu0 %2343  ;;  %2033 = vmatpush.msk.msrb.mxu2 %vm630_vm3, %v1460_v13 }
 0x15a   : > { %1668 = vmatpush.msrb.mxu2 %v1492_v48  ;;  %v2320_v48 = vunpack.i.l.bf16 %v3534_v30 }
 0x15b   : > { %v3635_v4 = vpop.permute.xlu2 %2338 }
 0x15c   : > { %v2341_v41 = vunpack.i.h.bf16 %v3635_v4  ;;  %v4080_v2 = vunpack.i.l.bf16 %v3635_v4  ;;  %1669 = vmatpush.msrb.mxu2 %v1476_v3  ;;  %v2330_v3 = vunpack.i.l.bf16 %v3568_v53 }
 0x15d   : > { %2034 = vmatmul.msk.f32.vlgmr.msrb.gmra.mxu2 %vm668_vm5, %v3236_v60 }
 0x15e   : > { %v3655_v32 = vpop.permute.xlu1 %1442  ;;  %v1369_v21 = vsel %vm517_vm2, %v4080_v2, %v2341_v41 }
 0x15f   : > { %v1464_v14 = vsel %vm613_vm4, %v3592_v31, %v3655_v32  ;;  %v1496_v16 = vsel %vm630_vm3, %v1273_v44, %v1369_v21  ;;  %v2336_v44 = vunpack.i.h.bf16 %v3572_v46  ;;  %v1465_v15 = vsel %vm613_vm4, %v3655_v32, %v3594_v35 }
 0x160   : > { %v2364_v19 = vpop.permute.xlu0 %2363  ;;  %2041 = vmatpush.msk.msra.mxu2 %vm630_vm3, %v1464_v14 }
 0x161   : > { %v2366_v21 = vunpack.i.h.bf16 %v2364_v19  ;;  %v2365_v14 = vunpack.i.l.bf16 %v2364_v19  ;;  %v1175_v19 = vsel %vm324_vm0, %v2286_v23, %v2330_v3  ;;  %v1264_v26 = vsel %vm420_vm1, %v2336_v44, %v2291_v25 }
 0x162   : > { %1748 = vmatpush.msra.mxu2 %v1496_v16  ;;  %v2335_v16 = vunpack.i.l.bf16 %v3572_v46  ;;  %v1172_v46 = vsel %vm324_vm0, %v2281_v20, %v2331_v52 }
 0x163   : > { %v3671_v57 = vpop.permute.xlu2 %2358  ;;  %v1359_v2 = vsel %vm517_vm2, %v2365_v14, %v2366_v21  ;;  %v2346_v14 = vunpack.i.h.bf16 %v3633_v58 }
 0x164   : > { %v1263_v55 = vsel %vm420_vm1, %v2335_v16, %v2336_v44  ;;  %v4201_v44 = vld [vmem:[#allocation17_spill] sm:$0xff]  ;;  %v2361_v42 = vunpack.i.h.bf16 %v3671_v57 }
 0x165   : > { %v1474_v16 = vsel %vm630_vm3, %v4201_v44, %v1172_v46  ;;  %v4205_v44 = vunpack.i.l.bf16 %v3635_v4 }
 0x166   : > { %v3674_v9 = vpop.permute.xlu1 %2348  ;;  %v1176_v4 = vsel %vm324_vm0, %v2330_v3, %v2361_v42 }
 0x168   : > { %v3676_v8 = vpop.permute.xlu0 %2373 }
 0x169   : > { %v2375_v20 = vunpack.i.l.bf16 %v3676_v8 }
 0x16b   : > { %v3678_v34 = vpop.permute.xlu2 %1450 }
 0x16e   : > { %v3680_v36 = vpop.permute.xlu1 %2353 }
 0x16f   : > { %v4081_v6 = vunpack.i.h.bf16 %v3680_v36  ;;  %v4079_v62 = vunpack.i.l.bf16 %v3680_v36 }
 0x171   : > { %v1178_v17 = vsel %vm324_vm0, %v4079_v62, %v4081_v6 }
 0x172   : > { %v1480_v0 = vsel %vm630_vm3, %v4197_v18, %v1178_v17 }
 0x173   : > { %v3691_v50 = vpop.permute.xlu2 %2368  ;;  %1749 = vmatpush.msra.mxu2 %v1480_v0  ;;  %v1168_v0 = vsel %vm324_vm0, %v2320_v48, %v2321_v12  ;;  %v1360_v12 = vsel %vm517_vm2, %v2366_v21, %v2311_v27  ;;  %v1173_v48 = vsel %vm324_vm0, %v2331_v52, %v2285_v5  ;;  %v1486_v5 = vsel %vm630_vm3, %v1263_v55, %v1359_v2  ;;  %v4199_v2 = vld [vmem:[#allocation33_spill] sm:$0xff]  ;;  %v4200_v52 = vld [vmem:[#allocation24_spill] sm:$0xff] }
 0x174   : > { %2042 = vmatmul.msk.f32.vlgmr.msra.gmra.mxu2 %vm668_vm5, %v3236_v60  ;;  %v2370_v17 = vunpack.i.l.bf16 %v3691_v50  ;;  %v2371_v49 = vunpack.i.h.bf16 %v3691_v50  ;;  %v1487_v25 = vsel %vm630_vm3, %v1264_v26, %v1360_v12  ;;  %v1477_v21 = vsel %vm630_vm3, %v4200_v52, %v1175_v19  ;;  %v4204_v50 = vld [vmem:[#allocation26_spill] sm:$0xff] }
 0x175   : > { %v1421_v28 = vpop.permute.xlu0 %1420  ;;  %v2360_v19 = vunpack.i.l.bf16 %v3671_v57 }
 0x176   : > { %v3695_v13 = vpop.permute.xlu1 %1448  ;;  %v1366_v1 = vsel %vm517_vm2, %v2326_v39, %v2370_v17 }
 0x177   : > { %v1468_v38 = vsel %vm613_vm4, %v3695_v13, %v3678_v34 }
 0x178   : > { %2049 = vmatpush.msk.msrb.mxu2 %vm630_vm3, %v1468_v38  ;;  %v2345_v38 = vunpack.i.l.bf16 %v3633_v58 }
 0x17a   : > { %v1270_v39 = vsel %vm420_vm1, %v2301_v51, %v2345_v38  ;;  %v1459_v51 = vsel %vm613_vm4, %v3558_v22, %v3623_v56  ;;  %v1268_v22 = vsel %vm420_vm1, %v2346_v14, %v2300_v63 }
 0x17b   : > { %v3709_v18 = vpop.permute.xlu2 %2383 }
 0x17d   : > { %v3700_v61 = vpop.permute.xlu0 %2388 }
 0x17e   : > { %v1423_v62 = vpop.permute.xlu1 %1422  ;;  %v2391_v56 = vunpack.i.h.bf16 %v3700_v61  ;;  %v2390_v46 = vunpack.i.l.bf16 %v3700_v61 }
 0x17f   : > { %v1454_v6 = vsel %vm613_vm4, %v1421_v28, %v1423_v62  ;;  %v1455_v30 = vsel %vm613_vm4, %v1423_v62, %v3570_v40  ;;  %v2350_v40 = vunpack.i.l.bf16 %v3674_v9  ;;  %v1471_v28 = vsel %vm630_vm3, %v4199_v2, %v3552_v59  ;;  %v4202_v59 = vld [vmem:[#allocation18_spill] sm:$0xff] }
 0x180   : > { %2021 = vmatpush.msk.msra.mxu0 %vm630_vm3, %v1454_v6  ;;  %2023 = vmatpush.msk.msra.mxu1 %vm630_vm3, %v1455_v30  ;;  %v4198_v6 = vld [vmem:[#allocation32_spill] sm:$0xff]  ;;  %v2351_v30 = vunpack.i.h.bf16 %v3674_v9  ;;  %v1475_v12 = vsel %vm630_vm3, %v4202_v59, %v1173_v48 }
 0x181   : > { %v1470_v62 = vsel %vm630_vm3, %v4198_v6, %v1168_v0  ;;  %v1267_v0 = vsel %vm420_vm1, %v2296_v45, %v2346_v14  ;;  %v1274_v29 = vsel %vm420_vm1, %v2306_v11, %v2350_v40  ;;  %v1370_v45 = vsel %vm517_vm2, %v2341_v41, %v2375_v20 }
 0x182   : > { %1548 = vmatpush.msra.mxu0 %v1486_v5  ;;  %1568 = vmatpush.msra.mxu1 %v1487_v25  ;;  %v1363_v11 = vsel %vm517_vm2, %v2316_v54, %v2371_v49  ;;  %v1364_v41 = vsel %vm517_vm2, %v2371_v49, %v2325_v33  ;;  %v2376_v54 = vunpack.i.h.bf16 %v3676_v8  ;;  %v1272_v33 = vsel %vm420_vm1, %v2351_v30, %v2305_v7 }
 0x183   : > { %v3797_v10 = vpop.permute.xlu2 %2393  ;;  %v1497_v32 = vsel %vm630_vm3, %v1274_v29, %v1370_v45  ;;  %v4203_v5 = vunpack.i.h.bf16 %v3680_v36  ;;  %v2385_v25 = vunpack.i.l.bf16 %v3709_v18  ;;  %v1373_v6 = vsel %vm517_vm2, %v2390_v46, %v2391_v56  ;;  %v4208_v29 = vld [vmem:[#allocation35_spill] sm:$0xff] }
 0x184   : > { %1549 = vmatpush.msra.mxu0 %v1470_v62  ;;  %1569 = vmatpush.msra.mxu1 %v1471_v28  ;;  %v2396_v48 = vunpack.i.h.bf16 %v3797_v10  ;;  %v2395_v14 = vunpack.i.l.bf16 %v3797_v10  ;;  %v1367_v62 = vsel %vm517_vm2, %v2370_v17, %v2376_v54  ;;  %v1478_v45 = vsel %vm630_vm3, %v4208_v29, %v1176_v4 }
 0x185   : > { %v3732_v23 = vpop.permute.xlu0 %1436  ;;  %2022 = vmatmul.msk.f32.vlgmr.msra.gmra.mxu0 %vm668_vm5, %v3236_v60  ;;  %2024 = vmatmul.msk.f32.vlgmr.msra.gmra.mxu1 %vm668_vm5, %v3236_v60  ;;  %v1179_v49 = vsel %vm324_vm0, %v4203_v5, %v2360_v19 }
 0x186   : > { %v1461_v27 = vsel %vm613_vm4, %v3543_v37, %v3732_v23  ;;  %v1493_v37 = vsel %vm630_vm3, %v1270_v39, %v1366_v1  ;;  %v3801_v63 = vpop.permute.xlu1 %2378  ;;  %2029 = vmatpush.msk.msrb.mxu0 %vm630_vm3, %v3566_v24  ;;  %2031 = vmatpush.msk.msrb.mxu1 %vm630_vm3, %v1459_v51  ;;  %v1490_v1 = vsel %vm630_vm3, %v1267_v0, %v1363_v11 }
 0x187   : > { %2035 = vmatpush.msk.msrb.mxu3 %vm630_vm3, %v1461_v27  ;;  %v2381_v55 = vunpack.i.h.bf16 %v3801_v63  ;;  %v2380_v26 = vunpack.i.l.bf16 %v3801_v63  ;;  %v1491_v27 = vsel %vm630_vm3, %v1268_v22, %v1364_v41  ;;  %v1182_v52 = vsel %vm324_vm0, %v2395_v14, %v2396_v48 }
 0x188   : > { %1628 = vmatpush.msrb.mxu0 %v1490_v1  ;;  %1648 = vmatpush.msrb.mxu1 %v1491_v27  ;;  %v1481_v17 = vsel %vm630_vm3, %v4204_v50, %v1179_v49  ;;  %v1368_v51 = vsel %vm517_vm2, %v2376_v54, %v4205_v44  ;;  %v4207_v22 = vunpack.i.l.bf16 %v3680_v36  ;;  %v2386_v54 = vunpack.i.h.bf16 %v3709_v18 }
 0x189   : > { %1688 = vmatpush.msrb.mxu3 %v1493_v37  ;;  %v1277_v39 = vsel %vm420_vm1, %v2380_v26, %v2381_v55  ;;  %v1278_v3 = vsel %vm420_vm1, %v2381_v55, %v2385_v25 }
 0x18a   : > { %v1500_v28 = vsel %vm630_vm3, %v1277_v39, %v1373_v6  ;;  %1629 = vmatpush.msrb.mxu0 %v1474_v16  ;;  %1649 = vmatpush.msrb.mxu1 %v1475_v12  ;;  %v4206_v16 = vld [vmem:[#allocation27_spill] sm:$0xff]  ;;  %v1177_v58 = vsel %vm324_vm0, %v2361_v42, %v4207_v22  ;;  %v1276_v1 = vsel %vm420_vm1, %v2386_v54, %v2380_v26  ;;  %v4211_v6 = vld [vmem:[#allocation21_spill] sm:$0xff] }
 0x18b   : > { %1689 = vmatpush.msrb.mxu3 %v1477_v21  ;;  %v781_v7 = vpop.f32.mrf.mxu3  ;;  %1828 = vmatpush.msrb.mxu2 %v1500_v28  ;;  %v1484_v59 = vsel %vm630_vm3, %v4206_v16, %v1182_v52 }
 0x18c   : > { %2036 = vmatmul.msk.f32.vlgmr.msrb.gmra.mxu3 %vm668_vm5, %v3236_v60  ;;  %v761_v43 = vpop.f32.mrf.mxu2  ;;  %v782_v2 = vadd.f32 %v781_v7, %v3186_v47 }
 0x18d   : > { %v1439_v24 = vpop.permute.xlu0 %1438  ;;  %2043 = vmatpush.msk.msra.mxu3 %vm630_vm3, %v1465_v15  ;;  %v762_v37 = vadd.f32 %v761_v43, %v3186_v47  ;;  %2032 = vmatmul.msk.f32.vlgmr.msrb.gmra.mxu1 %vm668_vm5, %v3236_v60 }
 0x18e   : > { %v1462_v21 = vsel %vm613_vm4, %v3732_v23, %v1439_v24  ;;  %v1463_v0 = vsel %vm613_vm4, %v1439_v24, %v3592_v31  ;;  %v1271_v23 = vsel %vm420_vm1, %v2345_v38, %v2351_v30  ;;  %1027 = vst [vmem:[%s3867_s30 + $0x18] sm:$0xff] %v782_v2  ;;  %v1358_v12 = vpop.permute.xlu1 %1357  ;;  %v1495_v38 = vsel %vm630_vm3, %v1272_v33, %v1368_v51  ;;  %v1352_v24 = vpop.permute.xlu2 %1351 }
 0x18f   : > { %1768 = vmatpush.msra.mxu3 %v1497_v32  ;;  %1026 = vst [vmem:[%s3867_s30 + $0x10] sm:$0xff] %v762_v37  ;;  %2037 = vmatpush.msk.msra.mxu0 %vm630_vm3, %v1462_v21  ;;  %v1494_v31 = vsel %vm630_vm3, %v1271_v23, %v1367_v62  ;;  %v1374_v53 = vsel %vm517_vm2, %v2391_v56, %v1358_v12  ;;  %v4209_v56 = vld [vmem:[#allocation36_spill] sm:$0xff]  ;;  %v4212_v37 = vld [vmem:[#allocation22_spill] sm:$0xff] }
 0x190   : > { %2039 = vmatpush.msk.msra.mxu1 %vm630_vm3, %v1463_v0  ;;  %2030 = vmatmul.msk.f32.vlgmr.msrb.gmra.mxu0 %vm668_vm5, %v3236_v60  ;;  %v1479_v11 = vsel %vm630_vm3, %v4209_v56, %v1177_v58  ;;  %v1501_v15 = vsel %vm630_vm3, %v1278_v3, %v1374_v53  ;;  %v1371_v27 = vsel %vm517_vm2, %v2375_v20, %v1352_v24 }
 0x191   : > { %1769 = vmatpush.msra.mxu3 %v1481_v17  ;;  %1708 = vmatpush.msra.mxu0 %v1494_v31  ;;  %v1372_v5 = vsel %vm517_vm2, %v1352_v24, %v2390_v46  ;;  %v4210_v46 = vld [vmem:[#allocation28_spill] sm:$0xff] }
 0x192   : > { %1728 = vmatpush.msra.mxu1 %v1495_v38  ;;  %1829 = vmatpush.msrb.mxu2 %v1484_v59 }
 0x193   : > { %1709 = vmatpush.msra.mxu0 %v1478_v45  ;;  %v861_v55 = vpop.f32.mrf.mxu3  ;;  %2050 = vmatmul.msk.f32.vlgmr.msrb.gmra.mxu2 %vm668_vm5, %v3236_v60 }
 0x194   : > { %2044 = vmatmul.msk.f32.vlgmr.msra.gmra.mxu3 %vm668_vm5, %v3236_v60  ;;  %1729 = vmatpush.msra.mxu1 %v1479_v11 }
 0x195   : > { %v1453_v30 = vpop.permute.xlu0 %1452  ;;  %v841_v41 = vpop.f32.mrf.mxu2  ;;  %2040 = vmatmul.msk.f32.vlgmr.msra.gmra.mxu1 %vm668_vm5, %v3236_v60 }
 0x196   : > { %v1469_v36 = vsel %vm613_vm4, %v3678_v34, %v1453_v30  ;;  %v842_v42 = vadd.f32 %v841_v41, %v3186_v47  ;;  %v862_v34 = vadd.f32 %v861_v55, %v3186_v47  ;;  %v1447_v33 = vpop.permute.xlu1 %1446 }
 0x197   : > { %2051 = vmatpush.msk.msrb.mxu3 %vm630_vm3, %v1469_v36  ;;  %v1466_v32 = vsel %vm613_vm4, %v3594_v35, %v1447_v33  ;;  %v1467_v18 = vsel %vm613_vm4, %v1447_v33, %v3695_v13  ;;  %v1275_v35 = vsel %vm420_vm1, %v2350_v40, %v2386_v54  ;;  %v1499_v13 = vsel %vm630_vm3, %v1276_v1, %v1372_v5 }
 0x198   : > { %1030 = vst [vmem:[%s3867_s30 + $0x30] sm:$0xff] %v842_v42  ;;  %2038 = vmatmul.msk.f32.vlgmr.msra.gmra.mxu0 %vm668_vm5, %v3236_v60  ;;  %2047 = vmatpush.msk.msrb.mxu1 %vm630_vm3, %v1467_v18  ;;  %v1498_v49 = vsel %vm630_vm3, %v1275_v35, %v1371_v27 }
 0x199   : > { %1848 = vmatpush.msrb.mxu3 %v1501_v15  ;;  %1031 = vst [vmem:[%s3867_s30 + $0x38] sm:$0xff] %v862_v34  ;;  %2045 = vmatpush.msk.msrb.mxu0 %vm630_vm3, %v1466_v32 }
 0x19a   : > { %1808 = vmatpush.msrb.mxu1 %v1499_v13 }
 0x19b   : > { %v941_v20 = vpop.f32.mrf.mxu3  ;;  %1788 = vmatpush.msrb.mxu0 %v1498_v49 }
 0x19d   : > { %v1167_v63 = vpop.permute.xlu0 %1166  ;;  %v921_v61 = vpop.f32.mrf.mxu2 }
 0x19e   : > { %v1183_v8 = vsel %vm324_vm0, %v2396_v48, %v1167_v63  ;;  %v922_v25 = vadd.f32 %v921_v61, %v3186_v47  ;;  %v942_v48 = vadd.f32 %v941_v20, %v3186_v47 }
 0x19f   : > { %v1485_v26 = vsel %vm630_vm3, %v4210_v46, %v1183_v8 }
 0x1a0   : > { %1849 = vmatpush.msrb.mxu3 %v1485_v26  ;;  %1034 = vst [vmem:[%s3867_s30 + $0x50] sm:$0xff] %v922_v25 }
 0x1a1   : > { %2052 = vmatmul.msk.f32.vlgmr.msrb.gmra.mxu3 %vm668_vm5, %v3236_v60  ;;  %1035 = vst [vmem:[%s3867_s30 + $0x58] sm:$0xff] %v942_v48 }
 0x1a2   : > { %v741_v7 = vpop.f32.mrf.mxu1 }
 0x1a3   : > { %v742_v28 = vadd.f32 %v741_v7, %v3186_v47 }
 0x1a5   : > { %v1161_v9 = vpop.permute.xlu0 %1160  ;;  %v1001_v39 = vpop.f32.mrf.mxu2  ;;  %1025 = vst [vmem:[%s3867_s30 + $0x8] sm:$0xff] %v742_v28 }
 0x1a6   : > { %v1180_v40 = vsel %vm324_vm0, %v2360_v19, %v1161_v9  ;;  %v1181_v43 = vsel %vm324_vm0, %v1161_v9, %v2395_v14  ;;  %v1002_v57 = vadd.f32 %v1001_v39, %v3186_v47  ;;  %v721_v19 = vpop.f32.mrf.mxu0 }
 0x1a7   : > { %v1482_v62 = vsel %vm630_vm3, %v4211_v6, %v1180_v40  ;;  %v1483_v2 = vsel %vm630_vm3, %v4212_v37, %v1181_v43  ;;  %v722_v10 = vadd.f32 %v721_v19, %v3186_v47 }
 0x1a8   : > { %1789 = vmatpush.msrb.mxu0 %v1482_v62  ;;  %1809 = vmatpush.msrb.mxu1 %v1483_v2  ;;  %1038 = vst [vmem:[%s3867_s30 + $0x70] sm:$0xff] %v1002_v57 }
 0x1a9   : > { %2046 = vmatmul.msk.f32.vlgmr.msrb.gmra.mxu0 %vm668_vm5, %v3236_v60  ;;  %2048 = vmatmul.msk.f32.vlgmr.msrb.gmra.mxu1 %vm668_vm5, %v3236_v60  ;;  %1024 = vst [vmem:[%s3867_s30] sm:$0xff] %v722_v10 }
 0x1aa   : > { %v821_v14 = vpop.f32.mrf.mxu1 }
 0x1ab   : > { %v822_v21 = vadd.f32 %v821_v14, %v3186_v47 }
 0x1ad   : > { %1029 = vst [vmem:[%s3867_s30 + $0x28] sm:$0xff] %v822_v21 }
 0x1ae   : > { %v801_v52 = vpop.f32.mrf.mxu0 }
 0x1af   : > { %v802_v50 = vadd.f32 %v801_v52, %v3186_v47 }
 0x1b1   : > { %1028 = vst [vmem:[%s3867_s30 + $0x20] sm:$0xff] %v802_v50 }
 0x1b2   : > { %v901_v0 = vpop.f32.mrf.mxu1 }
 0x1b3   : > { %v902_v23 = vadd.f32 %v901_v0, %v3186_v47 }
 0x1b5   : > { %1033 = vst [vmem:[%s3867_s30 + $0x48] sm:$0xff] %v902_v23 }
 0x1b6   : > { %v1021_v17 = vpop.f32.mrf.mxu3  ;;  %v881_v44 = vpop.f32.mrf.mxu0 }
 0x1b7   : > { %v1022_v60 = vadd.f32 %v1021_v17, %v3186_v47  ;;  %v882_v51 = vadd.f32 %v881_v44, %v3186_v47 }
 0x1b9   : > { %1039 = vst [vmem:[%s3867_s30 + $0x78] sm:$0xff] %v1022_v60 }
 0x1ba   : > { %1032 = vst [vmem:[%s3867_s30 + $0x40] sm:$0xff] %v882_v51  ;;  %v981_v16 = vpop.f32.mrf.mxu1 }
 0x1bb   : > { %v982_v59 = vadd.f32 %v981_v16, %v3186_v47 }
 0x1bd   : > { %1037 = vst [vmem:[%s3867_s30 + $0x68] sm:$0xff] %v982_v59 }
 0x1be   : > { %v961_v4 = vpop.f32.mrf.mxu0 }
 0x1bf   : > { %v962_v31 = vadd.f32 %v961_v4, %v3186_v47 }
 0x1c1   : > { %1036 = vst [vmem:[%s3867_s30 + $0x60] sm:$0xff] %v962_v31 }
 0x1d8   : > { %v1591_v12 = vpop.f32.mrf.mxu2  ;;  %v1611_v22 = vpop.f32.mrf.mxu3 }
 0x1d9   : > { %v1592_v58 = vadd.f32 %v1591_v12, %v3186_v47  ;;  %v1612_v38 = vadd.f32 %v1611_v22, %v3186_v47 }
 0x1db   : > { %2055 = vst [vmem:[%s3867_s30 + $0x90] sm:$0xff] %v1592_v58 }
 0x1dc   : > { %2056 = vst [vmem:[%s3867_s30 + $0x98] sm:$0xff] %v1612_v38 }
 0x1e0   : > { %v1671_v53 = vpop.f32.mrf.mxu2 }
 0x1e1   : > { %v1672_v3 = vadd.f32 %v1671_v53, %v3186_v47 }
 0x1e3   : > { %2059 = vst [vmem:[%s3867_s30 + $0xb0] sm:$0xff] %v1672_v3 }
 0x1f7   : > { %v1751_v30 = vpop.f32.mrf.mxu2 }
 0x1f8   : > { %v1752_v36 = vadd.f32 %v1751_v30, %v3186_v47 }
 0x1fa   : > { %2063 = vst [vmem:[%s3867_s30 + $0xd0] sm:$0xff] %v1752_v36 }
 0x202   : > { %v1551_v29 = vpop.f32.mrf.mxu0  ;;  %v1571_v56 = vpop.f32.mrf.mxu1 }
 0x203   : > { %v1552_v45 = vadd.f32 %v1551_v29, %v3186_v47  ;;  %v1572_v11 = vadd.f32 %v1571_v56, %v3186_v47 }
 0x205   : > { %2053 = vst [vmem:[%s3867_s30 + $0x80] sm:$0xff] %v1552_v45 }
 0x206   : > { %2054 = vst [vmem:[%s3867_s30 + $0x88] sm:$0xff] %v1572_v11 }
 0x20a   : > { %v1651_v15 = vpop.f32.mrf.mxu1 }
 0x20b   : > { %v1652_v34 = vadd.f32 %v1651_v15, %v3186_v47 }
 0x20d   : > { %v1631_v42 = vpop.f32.mrf.mxu0  ;;  %2058 = vst [vmem:[%s3867_s30 + $0xa8] sm:$0xff] %v1652_v34 }
 0x20e   : > { %v1632_v54 = vadd.f32 %v1631_v42, %v3186_v47 }
 0x20f   : > { %v1691_v41 = vpop.f32.mrf.mxu3 }
 0x210   : > { %v1692_v55 = vadd.f32 %v1691_v41, %v3186_v47  ;;  %2057 = vst [vmem:[%s3867_s30 + $0xa0] sm:$0xff] %v1632_v54 }
 0x212   : > { %2060 = vst [vmem:[%s3867_s30 + $0xb8] sm:$0xff] %v1692_v55  ;;  %v1731_v33 = vpop.f32.mrf.mxu1 }
 0x213   : > { %v1732_v5 = vadd.f32 %v1731_v33, %v3186_v47 }
 0x215   : > { %v1711_v27 = vpop.f32.mrf.mxu0  ;;  %2062 = vst [vmem:[%s3867_s30 + $0xc8] sm:$0xff] %v1732_v5 }
 0x216   : > { %v1831_v32 = vpop.f32.mrf.mxu2  ;;  %v1712_v18 = vadd.f32 %v1711_v27, %v3186_v47 }
 0x217   : > { %v1771_v24 = vpop.f32.mrf.mxu3  ;;  %v1832_v63 = vadd.f32 %v1831_v32, %v3186_v47 }
 0x218   : > { %v1772_v1 = vadd.f32 %v1771_v24, %v3186_v47  ;;  %2061 = vst [vmem:[%s3867_s30 + $0xc0] sm:$0xff] %v1712_v18 }
 0x219   : > { %2067 = vst [vmem:[%s3867_s30 + $0xf0] sm:$0xff] %v1832_v63 }
 0x21a   : > { %2064 = vst [vmem:[%s3867_s30 + $0xd8] sm:$0xff] %v1772_v1 }
 0x224   : > { %v1851_v8 = vpop.f32.mrf.mxu3 }
 0x225   : > { %v1852_v35 = vadd.f32 %v1851_v8, %v3186_v47 }
 0x226   : > { %v1791_v13 = vpop.f32.mrf.mxu0  ;;  %v1811_v61 = vpop.f32.mrf.mxu1 }
 0x227   : > { %2068 = vst [vmem:[%s3867_s30 + $0xf8] sm:$0xff] %v1852_v35  ;;  %v1792_v20 = vadd.f32 %v1791_v13, %v3186_v47  ;;  %v1812_v46 = vadd.f32 %v1811_v61, %v3186_v47 }
 0x229   : > { %2065 = vst [vmem:[%s3867_s30 + $0xe0] sm:$0xff] %v1792_v20 }
 0x22a   : > { %2066 = vst [vmem:[%s3867_s30 + $0xe8] sm:$0xff] %v1812_v46 }
 0x22b   : > { %2455 = shalt.err (!%p2452_p7)
}
 0x22c   : > { %s2520_s27 = smov 2048   ;;  %s2521_s28 = smov 6144  }
 0x22d   : > { %s2522_s29 = smov 128  }
 0x22e   : > { %2079 = dma.vmem_to_hbm [thread:$0]  (%p2583_p4), %s1888_s8, 4096, %s1890_s9, %s1872_s15, %s2520_s27, %s2521_s28, %s2522_s29  }
 0x22f PF: > { %p2091_p9 = scmp.ge.s32.totalorder %s2510_s17, 2  ;;  %s1904_s30 = sand.u32 1, %s2490_s12  }
 0x230   : > { %s1905_s4 = scalar_lea.sflag [#allocation4], %s1904_s30 }
 0x231   : > { %p2086_p10 = pnand %p2091_p9, %p2590_p8 }
 0x233   : > { %p2087_p11 = pneg %p2086_p10 }
 0x235   : > { %2485 = dma.done.wait (%p2087_p11), %s1905_s4, 4096  }
 0x236   : > { %2487 = vsyncadd (%p2087_p11), %s1905_s4, 4294963200  ;;  %s17_s17 = sadd.s32 1, %s2510_s17   ;;  %s4213_s12 = smov %s2494_s13 }
 0x237   : > { %p14_p12 = scmp.ge.s32.totalorder %s17_s17, 5   ;;  %s4214_s13 = smov %s2498_s14 }
 0x238   : > { %s4215_s14 = smov %s2596_s25  ;;  %s4216_s15 = smov %s2506_s16 }
 0x239   : > { %s4217_s16 = smov %s4219_s20  ;;  %16 = sbr.rel (!%p14_p12) target bundleno = 5 (0x5), region = 107 }
 0x23e   :  { %1911 = vsyncpa [#allocation3], 1 }
 0x23f   :  { %1913 = vsyncpa [#allocation3 + $0x1], 1 }
 0x240   :  { %1914 = vsyncpa [#allocation4], 1 }
 0x241   :  { %1916 = vsyncpa [#allocation4 + $0x1], 1 }

</bundles_post_ra>
